<compile_context>
chip_gen: v7x
topology: tpu7x:2x2x1
jax: 0.10.0
libtpu: 0.0.40
codegen_flags: <defaults>
</compile_context>

<pallas_src>
import functools

import jax
import jax.numpy as jnp
from jax.experimental import pallas as pl
from jax.experimental.pallas import tpu as pltpu

# Hidden dims of the classifier head.
H1, H2, H3, H4 = 1024, 512, 256, 128
NUM_CLASSES = 10
OUT_PAD = 128  # last layer padded to 128 lanes for a lane-dense store


def _default_tile_m():
    """MXU-matched batch tile: 128 on v5, 256 on v6e/v7x (and as a fallback)."""
    try:
        kind = jax.devices()[0].device_kind.lower()
    except Exception:  # pragma: no cover - defensive
        kind = ""
    return 128 if "v5" in kind else 256


def _mlp_kernel(x_ref,
                w1_ref, b1_ref,
                w2_ref, b2_ref,
                w3_ref, b3_ref,
                w4_ref, b4_ref,
                w5_ref, b5_ref,
                o_ref):
    """Fused 5-layer MLP: (Linear+ReLU) x4 -> Linear. Dropout = identity (eval).

    x / weights are bf16; every matmul accumulates in f32 on the MXU; the
    intermediate activation is re-quantized to bf16 between layers.
    """
    h = x_ref[...]  # (TM, in) bf16

    h = jnp.dot(h, w1_ref[...], preferred_element_type=jnp.float32) + b1_ref[...]
    h = jnp.maximum(h, 0.0).astype(jnp.bfloat16)

    h = jnp.dot(h, w2_ref[...], preferred_element_type=jnp.float32) + b2_ref[...]
    h = jnp.maximum(h, 0.0).astype(jnp.bfloat16)

    h = jnp.dot(h, w3_ref[...], preferred_element_type=jnp.float32) + b3_ref[...]
    h = jnp.maximum(h, 0.0).astype(jnp.bfloat16)

    h = jnp.dot(h, w4_ref[...], preferred_element_type=jnp.float32) + b4_ref[...]
    h = jnp.maximum(h, 0.0).astype(jnp.bfloat16)

    # Final linear into padded lane-dense f32 output (padded columns are zero).
    o_ref[...] = (jnp.dot(h, w5_ref[...], preferred_element_type=jnp.float32)
                  + b5_ref[...])


@functools.partial(jax.jit, static_argnames=("tm",))
def _forward_impl(x_pad, params, *, tm):
    """x_pad: (batch_pad, input_size) bf16 with batch_pad % tm == 0."""
    batch_pad, input_size = x_pad.shape
    (w1, b1, w2, b2, w3, b3, w4, b4, w5, b5) = params

    grid = (batch_pad // tm,)

    x_spec = pl.BlockSpec((tm, input_size), lambda i: (i, 0))
    # Weights / biases: whole-array blocks with a constant index_map -> DMA'd
    # once and kept resident in VMEM across all batch-grid steps.
    param_specs = [
        pl.BlockSpec(p.shape, lambda i: (0, 0))
        for p in (w1, b1, w2, b2, w3, b3, w4, b4, w5, b5)
    ]
    out_spec = pl.BlockSpec((tm, OUT_PAD), lambda i: (i, 0))

    return pl.pallas_call(
        _mlp_kernel,
        out_shape=jax.ShapeDtypeStruct((batch_pad, OUT_PAD), jnp.float32),
        grid=grid,
        in_specs=[x_spec] + param_specs,
        out_specs=out_spec,
        compiler_params=pltpu.CompilerParams(
            dimension_semantics=("parallel",)),
    )(x_pad, w1, b1, w2, b2, w3, b3, w4, b4, w5, b5)


def genre_classifier_forward(x, params, tm=None):
    """x: (batch, input_size) float32. Returns (batch, NUM_CLASSES) f32 logits."""
    batch, _ = x.shape
    if tm is None:
        tm = _default_tile_m()
    # Tiny batches: single grid point (pad batch only to a sublane multiple)
    # instead of a grid over the batch -- avoids pure per-step overhead.
    if batch <= tm:
        tm = max(8, -(-batch // 8) * 8)

    batch_pad = -(-batch // tm) * tm
    xb = x.astype(jnp.bfloat16)
    if batch_pad != batch:
        xb = jnp.pad(xb, ((0, batch_pad - batch), (0, 0)))

    out_padded = _forward_impl(xb, params, tm=tm)
    return out_padded[:batch, :NUM_CLASSES]


def init_params(key, input_size):
    """Deterministic synthetic parameters matching nn.Linear shapes.

    Weights stored transposed relative to PyTorch ((in, out)) and cast to bf16
    so the HBM->VMEM DMA moves half the bytes. Biases kept as (1, out) f32 rows
    (tiny; added after the f32 accumulation).
    """
    dims = [(input_size, H1), (H1, H2), (H2, H3), (H3, H4), (H4, NUM_CLASSES)]
    params = []
    for d_in, d_out in dims:
        key, kw, kb = jax.random.split(key, 3)
        scale = 1.0 / float(d_in) ** 0.5
        w = jax.random.uniform(kw, (d_in, d_out), jnp.float32, -scale, scale)
        b = jax.random.uniform(kb, (1, d_out), jnp.float32, -scale, scale)
        if d_out == NUM_CLASSES:
            # Pad last layer to OUT_PAD lanes with zeros (padded logits are
            # exactly zero and get sliced off in the wrapper).
            w = jnp.pad(w, ((0, 0), (0, OUT_PAD - NUM_CLASSES)))
            b = jnp.pad(b, ((0, 0), (0, OUT_PAD - NUM_CLASSES)))
        params.append(w.astype(jnp.bfloat16))
        params.append(b)
    return tuple(params)


def reference_forward(x, params):
    """Pure-JAX reference of the eval-mode forward pass (same bf16 quantization)."""
    (w1, b1, w2, b2, w3, b3, w4, b4, w5, b5) = params
    h = x.astype(jnp.bfloat16)
    for w, b in ((w1, b1), (w2, b2), (w3, b3), (w4, b4)):
        h = jnp.dot(h, w, preferred_element_type=jnp.float32) + b
        h = jnp.maximum(h, 0.0).astype(jnp.bfloat16)
    out = jnp.dot(h, w5, preferred_element_type=jnp.float32) + b5
    return out[:, :NUM_CLASSES]


if __name__ == "__main__":
    key = jax.random.PRNGKey(0)
    kx_small, kx_big, kp = jax.random.split(key, 3)

    input_size = 32
    params = init_params(kp, input_size)

    # Small batch: single grid point path.
    x_small = jax.random.normal(kx_small, (8, input_size), jnp.float32)
    out_small = jax.block_until_ready(genre_classifier_forward(x_small, params))
    ref_small = reference_forward(x_small, params)
    assert out_small.shape == (8, NUM_CLASSES), out_small.shape
    assert jnp.allclose(out_small, ref_small, atol=2e-2, rtol=2e-2), (
        float(jnp.max(jnp.abs(out_small - ref_small))))

    # Larger batch: batch-tiled grid with VMEM-resident weights.
    x_big = jax.random.normal(kx_big, (512, input_size), jnp.float32)
    out_big = jax.block_until_ready(genre_classifier_forward(x_big, params))
    ref_big = reference_forward(x_big, params)
    assert out_big.shape == (512, NUM_CLASSES), out_big.shape
    assert jnp.allclose(out_big, ref_big, atol=2e-2, rtol=2e-2), (
        float(jnp.max(jnp.abs(out_big - ref_big))))

    print("KERNEL_OK")
</pallas_src>

<mosaic_0001>
module attributes {stable_mosaic.version = 11 : i64} {
  func.func @_mlp_kernel(%arg0: i32, %arg1: memref<8x32xbf16, #tpu.memory_space<vmem>>, %arg2: memref<32x1024xbf16, #tpu.memory_space<vmem>>, %arg3: memref<1x1024xf32, #tpu.memory_space<vmem>>, %arg4: memref<1024x512xbf16, #tpu.memory_space<vmem>>, %arg5: memref<1x512xf32, #tpu.memory_space<vmem>>, %arg6: memref<512x256xbf16, #tpu.memory_space<vmem>>, %arg7: memref<1x256xf32, #tpu.memory_space<vmem>>, %arg8: memref<256x128xbf16, #tpu.memory_space<vmem>>, %arg9: memref<1x128xf32, #tpu.memory_space<vmem>>, %arg10: memref<128x128xbf16, #tpu.memory_space<vmem>>, %arg11: memref<1x128xf32, #tpu.memory_space<vmem>>, %arg12: memref<8x128xf32, #tpu.memory_space<vmem>>) attributes {dimension_semantics = [#tpu.dimension_semantics<parallel>], iteration_bounds = array<i64: 1>, scalar_prefetch = 0 : i64, scratch_operands = 0 : i64, tpu.core_type = #tpu.core_type<tc>, window_params = [{transform_indices = @transform_0, window_bounds = array<i64: 8, 32>}, {pipeline_mode = #tpu.pipeline_mode<synchronous>, transform_indices = @transform_1, window_bounds = array<i64: 32, 1024>}, {pipeline_mode = #tpu.pipeline_mode<synchronous>, transform_indices = @transform_2, window_bounds = array<i64: 1, 1024>}, {pipeline_mode = #tpu.pipeline_mode<synchronous>, transform_indices = @transform_3, window_bounds = array<i64: 1024, 512>}, {pipeline_mode = #tpu.pipeline_mode<synchronous>, transform_indices = @transform_4, window_bounds = array<i64: 1, 512>}, {pipeline_mode = #tpu.pipeline_mode<synchronous>, transform_indices = @transform_5, window_bounds = array<i64: 512, 256>}, {pipeline_mode = #tpu.pipeline_mode<synchronous>, transform_indices = @transform_6, window_bounds = array<i64: 1, 256>}, {pipeline_mode = #tpu.pipeline_mode<synchronous>, transform_indices = @transform_7, window_bounds = array<i64: 256, 128>}, {pipeline_mode = #tpu.pipeline_mode<synchronous>, transform_indices = @transform_8, window_bounds = array<i64: 1, 128>}, {pipeline_mode = #tpu.pipeline_mode<synchronous>, transform_indices = @transform_9, window_bounds = array<i64: 128, 128>}, {pipeline_mode = #tpu.pipeline_mode<synchronous>, transform_indices = @transform_10, window_bounds = array<i64: 1, 128>}, {transform_indices = @transform_11, window_bounds = array<i64: 8, 128>}]} {
    %c0 = arith.constant 0 : index
    %c0_0 = arith.constant 0 : index
    %0 = vector.load %arg1[%c0, %c0_0] : memref<8x32xbf16, #tpu.memory_space<vmem>>, vector<8x32xbf16>
    %c0_1 = arith.constant 0 : index
    %c0_2 = arith.constant 0 : index
    %1 = vector.load %arg2[%c0_1, %c0_2] : memref<32x1024xbf16, #tpu.memory_space<vmem>>, vector<32x1024xbf16>
    %cst = arith.constant dense<0.000000e+00> : vector<8x1024xf32>
    %2 = tpu.matmul %0, %1, %cst {dimension_numbers = #tpu.dot_dimension_numbers<[1], [0], [0], [1], [0, 0, 1, 1], [], []>} : vector<8x32xbf16>, vector<32x1024xbf16>, vector<8x1024xf32> -> vector<8x1024xf32>
    %c0_3 = arith.constant 0 : index
    %c0_4 = arith.constant 0 : index
    %3 = vector.load %arg3[%c0_3, %c0_4] : memref<1x1024xf32, #tpu.memory_space<vmem>>, vector<1x1024xf32>
    %4 = vector.broadcast %3 : vector<1x1024xf32> to vector<8x1024xf32>
    %5 = arith.addf %2, %4 : vector<8x1024xf32>
    %cst_5 = arith.constant 0.000000e+00 : f32
    %6 = vector.broadcast %cst_5 : f32 to vector<8x1024xf32>
    %7 = arith.maximumf %5, %6 : vector<8x1024xf32>
    %8 = arith.truncf %7 : vector<8x1024xf32> to vector<8x1024xbf16>
    %c0_6 = arith.constant 0 : index
    %c0_7 = arith.constant 0 : index
    %9 = vector.load %arg4[%c0_6, %c0_7] : memref<1024x512xbf16, #tpu.memory_space<vmem>>, vector<1024x512xbf16>
    %cst_8 = arith.constant dense<0.000000e+00> : vector<8x512xf32>
    %10 = tpu.matmul %8, %9, %cst_8 {dimension_numbers = #tpu.dot_dimension_numbers<[1], [0], [0], [1], [0, 0, 1, 1], [], []>} : vector<8x1024xbf16>, vector<1024x512xbf16>, vector<8x512xf32> -> vector<8x512xf32>
    %c0_9 = arith.constant 0 : index
    %c0_10 = arith.constant 0 : index
    %11 = vector.load %arg5[%c0_9, %c0_10] : memref<1x512xf32, #tpu.memory_space<vmem>>, vector<1x512xf32>
    %12 = vector.broadcast %11 : vector<1x512xf32> to vector<8x512xf32>
    %13 = arith.addf %10, %12 : vector<8x512xf32>
    %cst_11 = arith.constant 0.000000e+00 : f32
    %14 = vector.broadcast %cst_11 : f32 to vector<8x512xf32>
    %15 = arith.maximumf %13, %14 : vector<8x512xf32>
    %16 = arith.truncf %15 : vector<8x512xf32> to vector<8x512xbf16>
    %c0_12 = arith.constant 0 : index
    %c0_13 = arith.constant 0 : index
    %17 = vector.load %arg6[%c0_12, %c0_13] : memref<512x256xbf16, #tpu.memory_space<vmem>>, vector<512x256xbf16>
    %cst_14 = arith.constant dense<0.000000e+00> : vector<8x256xf32>
    %18 = tpu.matmul %16, %17, %cst_14 {dimension_numbers = #tpu.dot_dimension_numbers<[1], [0], [0], [1], [0, 0, 1, 1], [], []>} : vector<8x512xbf16>, vector<512x256xbf16>, vector<8x256xf32> -> vector<8x256xf32>
    %c0_15 = arith.constant 0 : index
    %c0_16 = arith.constant 0 : index
    %19 = vector.load %arg7[%c0_15, %c0_16] : memref<1x256xf32, #tpu.memory_space<vmem>>, vector<1x256xf32>
    %20 = vector.broadcast %19 : vector<1x256xf32> to vector<8x256xf32>
    %21 = arith.addf %18, %20 : vector<8x256xf32>
    %cst_17 = arith.constant 0.000000e+00 : f32
    %22 = vector.broadcast %cst_17 : f32 to vector<8x256xf32>
    %23 = arith.maximumf %21, %22 : vector<8x256xf32>
    %24 = arith.truncf %23 : vector<8x256xf32> to vector<8x256xbf16>
    %c0_18 = arith.constant 0 : index
    %c0_19 = arith.constant 0 : index
    %25 = vector.load %arg8[%c0_18, %c0_19] : memref<256x128xbf16, #tpu.memory_space<vmem>>, vector<256x128xbf16>
    %cst_20 = arith.constant dense<0.000000e+00> : vector<8x128xf32>
    %26 = tpu.matmul %24, %25, %cst_20 {dimension_numbers = #tpu.dot_dimension_numbers<[1], [0], [0], [1], [0, 0, 1, 1], [], []>} : vector<8x256xbf16>, vector<256x128xbf16>, vector<8x128xf32> -> vector<8x128xf32>
    %c0_21 = arith.constant 0 : index
    %c0_22 = arith.constant 0 : index
    %27 = vector.load %arg9[%c0_21, %c0_22] : memref<1x128xf32, #tpu.memory_space<vmem>>, vector<1x128xf32>
    %28 = vector.broadcast %27 : vector<1x128xf32> to vector<8x128xf32>
    %29 = arith.addf %26, %28 : vector<8x128xf32>
    %cst_23 = arith.constant 0.000000e+00 : f32
    %30 = vector.broadcast %cst_23 : f32 to vector<8x128xf32>
    %31 = arith.maximumf %29, %30 : vector<8x128xf32>
    %32 = arith.truncf %31 : vector<8x128xf32> to vector<8x128xbf16>
    %c0_24 = arith.constant 0 : index
    %c0_25 = arith.constant 0 : index
    %33 = vector.load %arg10[%c0_24, %c0_25] : memref<128x128xbf16, #tpu.memory_space<vmem>>, vector<128x128xbf16>
    %cst_26 = arith.constant dense<0.000000e+00> : vector<8x128xf32>
    %34 = tpu.matmul %32, %33, %cst_26 {dimension_numbers = #tpu.dot_dimension_numbers<[1], [0], [0], [1], [0, 0, 1, 1], [], []>} : vector<8x128xbf16>, vector<128x128xbf16>, vector<8x128xf32> -> vector<8x128xf32>
    %c0_27 = arith.constant 0 : index
    %c0_28 = arith.constant 0 : index
    %35 = vector.load %arg11[%c0_27, %c0_28] : memref<1x128xf32, #tpu.memory_space<vmem>>, vector<1x128xf32>
    %36 = vector.broadcast %35 : vector<1x128xf32> to vector<8x128xf32>
    %37 = arith.addf %34, %36 : vector<8x128xf32>
    %c0_29 = arith.constant 0 : index
    %c0_30 = arith.constant 0 : index
    %38 = vector.load %arg12[%c0_29, %c0_30] : memref<8x128xf32, #tpu.memory_space<vmem>>, vector<8x128xf32>
    tpu.vector_store %arg12[%c0_29, %c0_30], %37 {strides = array<i32>} : memref<8x128xf32, #tpu.memory_space<vmem>>, vector<8x128xf32>,
    return
  }
  func.func @transform_0(%arg0: i32) -> (i32, i32) {
    %c0_i32 = arith.constant 0 : i32
    %c0_i32_0 = arith.constant 0 : i32
    return %arg0, %c0_i32 : i32, i32
  }
  func.func @transform_1(%arg0: i32) -> (i32, i32) {
    %c0_i32 = arith.constant 0 : i32
    %c0_i32_0 = arith.constant 0 : i32
    %c0_i32_1 = arith.constant 0 : i32
    return %c0_i32, %c0_i32_0 : i32, i32
  }
  func.func @transform_2(%arg0: i32) -> (i32, i32) {
    %c0_i32 = arith.constant 0 : i32
    %c0_i32_0 = arith.constant 0 : i32
    %c0_i32_1 = arith.constant 0 : i32
    return %c0_i32, %c0_i32_0 : i32, i32
  }
  func.func @transform_3(%arg0: i32) -> (i32, i32) {
    %c0_i32 = arith.constant 0 : i32
    %c0_i32_0 = arith.constant 0 : i32
    %c0_i32_1 = arith.constant 0 : i32
    return %c0_i32, %c0_i32_0 : i32, i32
  }
  func.func @transform_4(%arg0: i32) -> (i32, i32) {
    %c0_i32 = arith.constant 0 : i32
    %c0_i32_0 = arith.constant 0 : i32
    %c0_i32_1 = arith.constant 0 : i32
    return %c0_i32, %c0_i32_0 : i32, i32
  }
  func.func @transform_5(%arg0: i32) -> (i32, i32) {
    %c0_i32 = arith.constant 0 : i32
    %c0_i32_0 = arith.constant 0 : i32
    %c0_i32_1 = arith.constant 0 : i32
    return %c0_i32, %c0_i32_0 : i32, i32
  }
  func.func @transform_6(%arg0: i32) -> (i32, i32) {
    %c0_i32 = arith.constant 0 : i32
    %c0_i32_0 = arith.constant 0 : i32
    %c0_i32_1 = arith.constant 0 : i32
    return %c0_i32, %c0_i32_0 : i32, i32
  }
  func.func @transform_7(%arg0: i32) -> (i32, i32) {
    %c0_i32 = arith.constant 0 : i32
    %c0_i32_0 = arith.constant 0 : i32
    %c0_i32_1 = arith.constant 0 : i32
    return %c0_i32, %c0_i32_0 : i32, i32
  }
  func.func @transform_8(%arg0: i32) -> (i32, i32) {
    %c0_i32 = arith.constant 0 : i32
    %c0_i32_0 = arith.constant 0 : i32
    %c0_i32_1 = arith.constant 0 : i32
    return %c0_i32, %c0_i32_0 : i32, i32
  }
  func.func @transform_9(%arg0: i32) -> (i32, i32) {
    %c0_i32 = arith.constant 0 : i32
    %c0_i32_0 = arith.constant 0 : i32
    %c0_i32_1 = arith.constant 0 : i32
    return %c0_i32, %c0_i32_0 : i32, i32
  }
  func.func @transform_10(%arg0: i32) -> (i32, i32) {
    %c0_i32 = arith.constant 0 : i32
    %c0_i32_0 = arith.constant 0 : i32
    %c0_i32_1 = arith.constant 0 : i32
    return %c0_i32, %c0_i32_0 : i32, i32
  }
  func.func @transform_11(%arg0: i32) -> (i32, i32) {
    %c0_i32 = arith.constant 0 : i32
    %c0_i32_0 = arith.constant 0 : i32
    return %arg0, %c0_i32 : i32, i32
  }
}

</mosaic_0001>

<bundles_post_ra>
// kernel: _forward_impl.1
= control target key start
LH: loop header
LB: loop body
LE: loop exit
PB: predicated region body
PF: predicated region fallthrough
CT: control target
= control target key end

     0   :  { %16 = vsyncpa [#allocation3], 0  ;;  %s4566_s0 = inlined_call_operand.hbm [shape: bf16[8,32], index: 0, kind: input, shape index: {}]   ;;  %s4567_s1 = inlined_call_operand.hbm [shape: bf16[32,1024], index: 1, kind: input, shape index: {}]   ;;  %s4568_s2 = inlined_call_operand.hbm [shape: f32[1,1024], index: 2, kind: input, shape index: {}]   ;;  %s4569_s3 = inlined_call_operand.hbm [shape: bf16[1024,512], index: 3, kind: input, shape index: {}]   ;;  %s4570_s4 = inlined_call_operand.vmem [shape: f32[1,512], index: 4, kind: input, shape index: {}]   ;;  %s4571_s5 = inlined_call_operand.hbm [shape: bf16[512,256], index: 5, kind: input, shape index: {}]   ;;  %s4572_s6 = inlined_call_operand.vmem [shape: f32[1,256], index: 6, kind: input, shape index: {}]   ;;  %s4573_s7 = inlined_call_operand.hbm [shape: bf16[256,128], index: 7, kind: input, shape index: {}]   ;;  %s4574_s8 = inlined_call_operand.vmem [shape: f32[1,128], index: 8, kind: input, shape index: {}]   ;;  %s4575_s9 = inlined_call_operand.hbm [shape: bf16[128,128], index: 9, kind: input, shape index: {}]   ;;  %s4576_s10 = inlined_call_operand.vmem [shape: f32[1,128], index: 10, kind: input, shape index: {}]   ;;  %s4577_s11 = inlined_call_operand.hbm [shape: f32[8,128], index: 11, kind: output, shape index: {}]  }
   0x1   :  { %17 = vsyncpa [#allocation6], 0 }
   0x2   :  { %18 = vsyncpa [#allocation9], 0 }
   0x3   :  { %19 = vsyncpa [#allocation12], 0 }
   0x4   :  { %20 = vsyncpa [#allocation4], 0  ;;  %s4297_s17 = smov [#allocation5]   ;;  %s4111_s21 = scalar_lea.hbm %s4567_s1, 2048 }
   0x5   :  { %s36_s18 = sshll.u32 %s4297_s17, 4  ;;  %p4112_p0 = scmp.ne.s32.totalorder %s4567_s1, %s4111_s21  ;;  %s37_s18 = int_to_ptr.vmem [resolvable:$true] %s36_s18 }
   0x6   :  { %p4115_p1 = scmp.lt.u32.totalorder %s4111_s21, %s4567_s1 }
   0x8   :  { %p4117_p2 = pnand %p4115_p1, %p4112_p0 }
   0xa   :  { %4120 = shalt.err (!%p4117_p2)
}
   0xb   :  { %s4121_s26 = scalar_lea.vmem %s37_s18, 2048  ;;  %p4126_p4 = scmp.lt.s32.totalorder %s37_s18, %s37_s18 }
   0xc   :  { %p4122_p3 = scmp.ne.s32.totalorder %s37_s18, %s4121_s26  ;;  %p4127_p5 = scmp.lt.s32.totalorder %s4121_s26, %s4121_s26 }
   0xe   :  { %p4128_p6 = por %p4127_p5, %p4126_p4 }
  0x10   :  { %p4129_p7 = pnand %p4128_p6, %p4122_p3 }
  0x12   :  { %4132 = shalt.err (!%p4129_p7)
}
  0x13   :  { %s4298_s27 = smov 512   ;;  %s4299_s28 = smov 32  }
  0x14   :  { %42 = dma.hbm_to_vmem [thread:$0]  %s4567_s1, 2048, %s37_s18, [#allocation6], %s4298_s27, %s4298_s27, %s4299_s28  }
  0x15   :  { %s4300_s12 = smov [#allocation8]   ;;  %s4133_s16 = scalar_lea.hbm %s4569_s3, 32768 }
  0x16   :  { %s58_s13 = sshll.u32 %s4300_s12, 4  ;;  %p4134_p8 = scmp.ne.s32.totalorder %s4569_s3, %s4133_s16  ;;  %s59_s13 = int_to_ptr.vmem [resolvable:$true] %s58_s13 }
  0x17   :  { %p4137_p9 = scmp.lt.u32.totalorder %s4133_s16, %s4569_s3 }
  0x19   :  { %p4139_p10 = pnand %p4137_p9, %p4134_p8 }
  0x1b   :  { %4142 = shalt.err (!%p4139_p10)
}
  0x1c   :  { %s4143_s22 = scalar_lea.vmem %s59_s13, 32768  ;;  %p4148_p12 = scmp.lt.s32.totalorder %s59_s13, %s59_s13 }
  0x1d   :  { %p4144_p11 = scmp.ne.s32.totalorder %s59_s13, %s4143_s22  ;;  %p4149_p13 = scmp.lt.s32.totalorder %s4143_s22, %s4143_s22 }
  0x1f   :  { %p4150_p0 = por %p4149_p13, %p4148_p12 }
  0x21   :  { %p4151_p1 = pnand %p4150_p0, %p4144_p11 }
  0x23   :  { %4154 = shalt.err (!%p4151_p1)
}
  0x24   :  { %s4301_s1 = smov 256   ;;  %s4302_s18 = smov 16  }
  0x25   :  { %64 = dma.hbm_to_vmem [thread:$0]  %s4569_s3, 32768, %s59_s13, [#allocation9], %s4301_s1, %s4301_s1, %s4302_s18  }
  0x26   :  { %s4303_s25 = smov [#allocation11]   ;;  %s4155_s29 = scalar_lea.hbm %s4573_s7, 2048 }
  0x27   :  { %s86_s26 = sshll.u32 %s4303_s25, 4  ;;  %p4156_p2 = scmp.ne.s32.totalorder %s4573_s7, %s4155_s29  ;;  %s87_s26 = int_to_ptr.vmem [resolvable:$true] %s86_s26 }
  0x28   :  { %p4159_p3 = scmp.lt.u32.totalorder %s4155_s29, %s4573_s7 }
  0x2a   :  { %p4161_p4 = pnand %p4159_p3, %p4156_p2 }
  0x2c   :  { %4164 = shalt.err (!%p4161_p4)
}
  0x2d   :  { %s4165_s16 = scalar_lea.vmem %s87_s26, 2048  ;;  %p4170_p6 = scmp.lt.s32.totalorder %s87_s26, %s87_s26 }
  0x2e   :  { %p4166_p5 = scmp.ne.s32.totalorder %s87_s26, %s4165_s16  ;;  %p4171_p7 = scmp.lt.s32.totalorder %s4165_s16, %s4165_s16 }
  0x30   :  { %p4172_p8 = por %p4171_p7, %p4170_p6 }
  0x32   :  { %p4173_p9 = pnand %p4172_p8, %p4166_p5 }
  0x34   :  { %4176 = shalt.err (!%p4173_p9)
}
  0x35   :  { %s4304_s3 = smov 64   ;;  %s4305_s13 = smov 4  }
  0x36   :  { %92 = dma.hbm_to_vmem [thread:$0]  %s4573_s7, 2048, %s87_s26, [#allocation12], %s4304_s3, %s4304_s3, %s4305_s13  }
  0x37   :  { %s4306_s20 = smov [#allocation2]   ;;  %s4307_s22 = smov [#allocation7]  }
  0x38   :  { %s27_s21 = sshll.u32 %s4306_s20, 4  ;;  %s49_s1 = sshll.u32 %s4307_s22, 4  ;;  %s28_s21 = int_to_ptr.vmem [resolvable:$true] %s27_s21  ;;  %s50_s1 = int_to_ptr.vmem [resolvable:$true] %s49_s1 }
  0x39   :  { %s4177_s24 = scalar_lea.hbm %s4566_s0, 64 }
  0x3a   :  { %p4178_p10 = scmp.ne.s32.totalorder %s4566_s0, %s4177_s24  ;;  %p4181_p11 = scmp.lt.u32.totalorder %s4177_s24, %s4566_s0 }
  0x3c   :  { %p4183_p12 = pnand %p4181_p11, %p4178_p10 }
  0x3e   :  { %4186 = shalt.err (!%p4183_p12)
}
  0x3f   :  { %s4187_s7 = scalar_lea.vmem %s28_s21, 64  ;;  %p4192_p0 = scmp.lt.s32.totalorder %s28_s21, %s28_s21 }
  0x40   :  { %p4188_p13 = scmp.ne.s32.totalorder %s28_s21, %s4187_s7  ;;  %p4193_p1 = scmp.lt.s32.totalorder %s4187_s7, %s4187_s7 }
  0x42   :  { %p4194_p2 = por %p4193_p1, %p4192_p0 }
  0x44   :  { %p4195_p3 = pnand %p4194_p2, %p4188_p13 }
  0x46   :  { %4198 = shalt.err (!%p4195_p3)
}
  0x47   :  { %30 = dma.hbm_to_vmem [thread:$0]  %s4566_s0, 64, %s28_s21, [#allocation3]  }
  0x48   :  { %s4199_s15 = scalar_lea.hbm %s4568_s2, 128 }
  0x49   :  { %p4200_p4 = scmp.ne.s32.totalorder %s4568_s2, %s4199_s15  ;;  %p4203_p5 = scmp.lt.u32.totalorder %s4199_s15, %s4568_s2 }
  0x4b   :  { %p4205_p6 = pnand %p4203_p5, %p4200_p4 }
  0x4d   :  { %4208 = shalt.err (!%p4205_p6)
}
  0x4e   :  { %s4209_s22 = scalar_lea.vmem %s50_s1, 128  ;;  %p4214_p8 = scmp.lt.s32.totalorder %s50_s1, %s50_s1 }
  0x4f   :  { %p4210_p7 = scmp.ne.s32.totalorder %s50_s1, %s4209_s22  ;;  %p4215_p9 = scmp.lt.s32.totalorder %s4209_s22, %s4209_s22 }
  0x51   :  { %p4216_p10 = por %p4215_p9, %p4214_p8 }
  0x53   :  { %p4217_p11 = pnand %p4216_p10, %p4210_p7 }
  0x55   :  { %4220 = shalt.err (!%p4217_p11)
}
  0x56   :  { %52 = dma.hbm_to_vmem [thread:$0]  %s4568_s2, 128, %s50_s1, [#allocation6]  }
  0x57   :  { %s4308_s18 = smov [#allocation10]   ;;  %s4221_s27 = scalar_lea.hbm %s4571_s5, 8192 }
  0x58   :  { %s72_s23 = sshll.u32 %s4308_s18, 4  ;;  %p4222_p12 = scmp.ne.s32.totalorder %s4571_s5, %s4221_s27  ;;  %s73_s23 = int_to_ptr.vmem [resolvable:$true] %s72_s23 }
  0x59   :  { %p4225_p13 = scmp.lt.u32.totalorder %s4221_s27, %s4571_s5 }
  0x5b   :  { %p4227_p0 = pnand %p4225_p13, %p4222_p12 }
  0x5d   :  { %4230 = shalt.err (!%p4227_p0)
}
  0x5e   :  { %s4231_s30 = scalar_lea.vmem %s73_s23, 8192  ;;  %p4236_p2 = scmp.lt.s32.totalorder %s73_s23, %s73_s23 }
  0x5f   :  { %p4232_p1 = scmp.ne.s32.totalorder %s73_s23, %s4231_s30  ;;  %p4237_p3 = scmp.lt.s32.totalorder %s4231_s30, %s4231_s30 }
  0x61   :  { %p4238_p4 = por %p4237_p3, %p4236_p2 }
  0x63   :  { %p4239_p5 = pnand %p4238_p4, %p4232_p1 }
  0x65   :  { %4242 = shalt.err (!%p4239_p5)
}
  0x66   :  { %s4309_s2 = smov 128   ;;  %s4310_s1 = smov 8  }
  0x67   :  { %78 = dma.hbm_to_vmem [thread:$0]  %s4571_s5, 8192, %s73_s23, [#allocation9], %s4309_s2, %s4309_s2, %s4310_s1  }
  0x68   :  { %s4311_s15 = smov [#allocation13]   ;;  %s4243_s20 = scalar_lea.hbm %s4575_s9, 1024 }
  0x69   :  { %s100_s16 = sshll.u32 %s4311_s15, 4  ;;  %p4244_p6 = scmp.ne.s32.totalorder %s4575_s9, %s4243_s20  ;;  %s101_s16 = int_to_ptr.vmem [resolvable:$true] %s100_s16 }
  0x6a   :  { %p4247_p7 = scmp.lt.u32.totalorder %s4243_s20, %s4575_s9 }
  0x6c   :  { %p4249_p8 = pnand %p4247_p7, %p4244_p6 }
  0x6e   :  { %4252 = shalt.err (!%p4249_p8)
}
  0x6f   :  { %s4253_s24 = scalar_lea.vmem %s101_s16, 1024  ;;  %p4258_p10 = scmp.lt.s32.totalorder %s101_s16, %s101_s16 }
  0x70   :  { %p4254_p9 = scmp.ne.s32.totalorder %s101_s16, %s4253_s24  ;;  %p4259_p11 = scmp.lt.s32.totalorder %s4253_s24, %s4253_s24 }
  0x72   :  { %p4260_p12 = por %p4259_p11, %p4258_p10 }
  0x74   :  { %p4261_p13 = pnand %p4260_p12, %p4254_p9 }
  0x76   :  { %4264 = shalt.err (!%p4261_p13)
}
  0x77   :  { %106 = dma.hbm_to_vmem [thread:$0]  %s4575_s9, 1024, %s101_s16, [#allocation12], %s4304_s3, %s4304_s3, %s4305_s13  }
  0x78   :  { %4287 = dma.done.wait [#allocation3], 64  }
  0x79   :  { %4288 = vsyncadd [#allocation3], 4294967232 }
  0x7a   :  { %4289 = dma.done.wait [#allocation6], 2176  }
  0x7b   :  { %4290 = vsyncadd [#allocation6], 4294965120 }
  0x7c   :  { %4291 = dma.done.wait [#allocation9], 40960  }
  0x7d   :  { %4292 = vsyncadd [#allocation9], 4294926336 }
  0x7e   :  { %4293 = dma.done.wait [#allocation12], 3072  }
  0x7f   :  { %4294 = vsyncadd [#allocation12], 4294964224  ;;  %v4312_v0 = vmov 0   ;;  %v132_v1 = vld [vmem:[#allocation5] sm:$0xff]  ;;  %v133_v8 = vld [vmem:[#allocation5 + $0x8] sm:$0xff]  ;;  %vm270_vm0 = vcmask 261120  }
  0x80   :  { %306 = vmatprep.mubr.bf16.mxu1 %v4312_v0  ;;  %v136_v2 = vld [vmem:[#allocation5 + $0x20] sm:$0xff]  ;;  %v137_v9 = vld [vmem:[#allocation5 + $0x28] sm:$0xff]  ;;  %v4467_v15 = vld [vmem:[#allocation2] sm:$0xf]  ;;  %vm4314_vm1 = vmmov 0   ;;  %s4315_s29 = smov [#allocation14]  }
  0x81   :  { %v140_v3 = vld [vmem:[#allocation5 + $0x40] sm:$0xff]  ;;  %v3138_v4 = vcombine.high %v132_v1, %v136_v2  ;;  %v3137_v5 = vcombine.low %v132_v1, %v136_v2  ;;  %v3140_v11 = vcombine.high %v133_v8, %v137_v9  ;;  %v141_v12 = vld [vmem:[#allocation5 + $0x48] sm:$0xff]  ;;  %v3139_v16 = vcombine.low %v133_v8, %v137_v9  ;;  %v134_v20 = vld [vmem:[#allocation5 + $0x10] sm:$0xff]  ;;  %s3125_s7 = sshll.u32 %s4315_s29, 4  ;;  %s3126_s7 = int_to_ptr.vmem [resolvable:$true] %s3125_s7 }
  0x82   :  { %v144_v6 = vld [vmem:[#allocation5 + $0x60] sm:$0xff]  ;;  %v145_v13 = vld [vmem:[#allocation5 + $0x68] sm:$0xff]  ;;  %v138_v21 = vld [vmem:[#allocation5 + $0x30] sm:$0xff]  ;;  %p4270_p1 = scmp.lt.s32.totalorder %s3126_s7, %s3126_s7 }
  0x83   :  { %v3146_v7 = vcombine.high %v140_v3, %v144_v6  ;;  %274 = vmatprep.subr.bf16.mxu1 %v3138_v4  ;;  %v3145_v10 = vcombine.low %v140_v3, %v144_v6  ;;  %v3607_v14 = vld [vmem:[#allocation8 + $0x4] ss:$16 sps:$4 sm:$0xff]   ;;  %v3612_v17 = vld [vmem:[#allocation8] ss:$16 sps:$4 sm:$0xff]   ;;  %v3148_v18 = vcombine.high %v141_v12, %v145_v13  ;;  %v3147_v24 = vcombine.low %v141_v12, %v145_v13  ;;  %v142_v26 = vld [vmem:[#allocation5 + $0x50] sm:$0xff] }
  0x84   :  { %275 = vmatpush1.bf16.msra.mxu1 %v3137_v5  ;;  %2012 = vmatprep.subr.bf16.mxu0 %v3607_v14  ;;  %v3613_v19 = vld [vmem:[#allocation8 + $0x24] ss:$16 sps:$4 sm:$0xff]   ;;  %v3618_v22 = vld [vmem:[#allocation8 + $0x20] ss:$16 sps:$4 sm:$0xff]   ;;  %v3142_v25 = vcombine.high %v134_v20, %v138_v21  ;;  %v146_v27 = vld [vmem:[#allocation5 + $0x70] sm:$0xff]  ;;  %v3141_v30 = vcombine.low %v134_v20, %v138_v21 }
  0x85   :  { %276 = vmatprep.subr.bf16.mxu1 %v3146_v7  ;;  %2013 = vmatpush1.bf16.msra.mxu0 %v3612_v17  ;;  %v3619_v23 = vld [vmem:[#allocation8 + $0x44] ss:$16 sps:$4 sm:$0xff]   ;;  %v3624_v28 = vld [vmem:[#allocation8 + $0x40] ss:$16 sps:$4 sm:$0xff]   ;;  %v3150_v31 = vcombine.high %v142_v26, %v146_v27  ;;  %v3149_v36 = vcombine.low %v142_v26, %v146_v27  ;;  %v3611_v47 = vld [vmem:[#allocation8 + $0xc] ss:$16 sps:$4 sm:$0xff]  }
  0x86   :  { %2014 = vmatprep.subr.bf16.mxu0 %v3613_v19  ;;  %v3625_v29 = vld [vmem:[#allocation8 + $0x64] ss:$16 sps:$4 sm:$0xff]   ;;  %v3630_v34 = vld [vmem:[#allocation8 + $0x60] ss:$16 sps:$4 sm:$0xff]   ;;  %v3609_v50 = vld [vmem:[#allocation8 + $0x8] ss:$16 sps:$4 sm:$0xff]  }
  0x87   :  { %v135_v32 = vld [vmem:[#allocation5 + $0x18] sm:$0xff]  ;;  %v3617_v51 = vld [vmem:[#allocation8 + $0x2c] ss:$16 sps:$4 sm:$0xff]   ;;  %v3615_v54 = vld [vmem:[#allocation8 + $0x28] ss:$16 sps:$4 sm:$0xff]  }
  0x88   :  { %277 = vmatpush1.bf16.msra.mxu1 %v3145_v10  ;;  %v139_v33 = vld [vmem:[#allocation5 + $0x38] sm:$0xff]  ;;  %v3623_v55 = vld [vmem:[#allocation8 + $0x4c] ss:$16 sps:$4 sm:$0xff]   ;;  %v3621_v58 = vld [vmem:[#allocation8 + $0x48] ss:$16 sps:$4 sm:$0xff]  }
  0x89   :  { %315 = vmatprep.subr.bf16.mxu1 %v3140_v11  ;;  %2015 = vmatpush1.bf16.msra.mxu0 %v3618_v22  ;;  %v3631_v35 = vld [vmem:[#allocation8 + $0x84] ss:$16 sps:$4 sm:$0xff]   ;;  %v3144_v37 = vcombine.high %v135_v32, %v139_v33  ;;  %v3636_v40 = vld [vmem:[#allocation8 + $0x80] ss:$16 sps:$4 sm:$0xff]   ;;  %v3143_v42 = vcombine.low %v135_v32, %v139_v33  ;;  %v3629_v59 = vld [vmem:[#allocation8 + $0x6c] ss:$16 sps:$4 sm:$0xff]  }
  0x8a   :  { %2016 = vmatprep.subr.bf16.mxu0 %v3619_v23  ;;  %v143_v38 = vld [vmem:[#allocation5 + $0x58] sm:$0xff]  ;;  %v3627_v60 = vld [vmem:[#allocation8 + $0x68] ss:$16 sps:$4 sm:$0xff]   ;;  %v3635_v62 = vld [vmem:[#allocation8 + $0x8c] ss:$16 sps:$4 sm:$0xff]  }
  0x8b   :  { %3153 = vmatmul.mubr.msk.bf16.vlgmr.msra.gmra.mrb[0].mxu1 %vm270_vm0, %v4467_v15  ;;  %v147_v39 = vld [vmem:[#allocation5 + $0x78] sm:$0xff]  ;;  %v3633_v2 = vld [vmem:[#allocation8 + $0x88] ss:$16 sps:$4 sm:$0xff]   ;;  %v3641_v3 = vld [vmem:[#allocation8 + $0xac] ss:$16 sps:$4 sm:$0xff]  }
  0x8c   :  { %316 = vmatpush1.bf16.msra.mxu1 %v3139_v16  ;;  %347 = vmatprep.mubr.bf16.mxu1 %v4312_v0  ;;  %v3637_v41 = vld [vmem:[#allocation8 + $0xa4] ss:$16 sps:$4 sm:$0xff]   ;;  %v3152_v43 = vcombine.high %v143_v38, %v147_v39  ;;  %v3642_v44 = vld [vmem:[#allocation8 + $0xa0] ss:$16 sps:$4 sm:$0xff]   ;;  %v3151_v46 = vcombine.low %v143_v38, %v147_v39  ;;  %v3639_v6 = vld [vmem:[#allocation8 + $0xa8] ss:$16 sps:$4 sm:$0xff]  }
  0x8d   :  { %317 = vmatprep.subr.bf16.mxu1 %v3148_v18  ;;  %2017 = vmatpush1.bf16.msra.mxu0 %v3624_v28  ;;  %v3643_v45 = vld [vmem:[#allocation8 + $0xc4] ss:$16 sps:$4 sm:$0xff]   ;;  %v3648_v48 = vld [vmem:[#allocation8 + $0xc0] ss:$16 sps:$4 sm:$0xff]   ;;  %v3647_v7 = vld [vmem:[#allocation8 + $0xcc] ss:$16 sps:$4 sm:$0xff]  }
  0x8e   :  { %2018 = vmatprep.subr.bf16.mxu0 %v3625_v29  ;;  %v3649_v49 = vld [vmem:[#allocation8 + $0xe4] ss:$16 sps:$4 sm:$0xff]   ;;  %v3654_v52 = vld [vmem:[#allocation8 + $0xe0] ss:$16 sps:$4 sm:$0xff]   ;;  %v3645_v10 = vld [vmem:[#allocation8 + $0xc8] ss:$16 sps:$4 sm:$0xff]  }
  0x8f   :  { %v3655_v53 = vld [vmem:[#allocation8 + $0x104] ss:$16 sps:$4 sm:$0xff]   ;;  %v3660_v56 = vld [vmem:[#allocation8 + $0x100] ss:$16 sps:$4 sm:$0xff]   ;;  %v3653_v11 = vld [vmem:[#allocation8 + $0xec] ss:$16 sps:$4 sm:$0xff]  }
  0x90   :  { %318 = vmatpush1.bf16.msra.mxu1 %v3147_v24  ;;  %v3661_v57 = vld [vmem:[#allocation8 + $0x124] ss:$16 sps:$4 sm:$0xff]   ;;  %v3666_v61 = vld [vmem:[#allocation8 + $0x120] ss:$16 sps:$4 sm:$0xff]   ;;  %v3651_v13 = vld [vmem:[#allocation8 + $0xe8] ss:$16 sps:$4 sm:$0xff]  }
  0x91   :  { %356 = vmatprep.subr.bf16.mxu1 %v3142_v25  ;;  %2019 = vmatpush1.bf16.msra.mxu0 %v3630_v34  ;;  %v3667_v63 = vld [vmem:[#allocation8 + $0x144] ss:$16 sps:$4 sm:$0xff]   ;;  %v3678_v4 = vld [vmem:[#allocation8 + $0x160] ss:$16 sps:$4 sm:$0xff]   ;;  %v3659_v14 = vld [vmem:[#allocation8 + $0x10c] ss:$16 sps:$4 sm:$0xff]  }
  0x92   :  { %2020 = vmatprep.subr.bf16.mxu0 %v3631_v35  ;;  %v3673_v1 = vld [vmem:[#allocation8 + $0x164] ss:$16 sps:$4 sm:$0xff]   ;;  %v3684_v8 = vld [vmem:[#allocation8 + $0x180] ss:$16 sps:$4 sm:$0xff]   ;;  %v3665_v16 = vld [vmem:[#allocation8 + $0x12c] ss:$16 sps:$4 sm:$0xff]  }
  0x93   :  { %3154 = vmatmul.mubr.msk.bf16.vlgmr.msra.gmra.mrb[4].mxu1 %vm270_vm0, %v4467_v15  ;;  %v3679_v5 = vld [vmem:[#allocation8 + $0x184] ss:$16 sps:$4 sm:$0xff]   ;;  %v3690_v12 = vld [vmem:[#allocation8 + $0x1a0] ss:$16 sps:$4 sm:$0xff]   ;;  %v3663_v17 = vld [vmem:[#allocation8 + $0x128] ss:$16 sps:$4 sm:$0xff]  }
  0x94   :  { %357 = vmatpush1.bf16.msra.mxu1 %v3141_v30  ;;  %388 = vmatprep.mubr.bf16.mxu1 %v4312_v0  ;;  %v3685_v9 = vld [vmem:[#allocation8 + $0x1a4] ss:$16 sps:$4 sm:$0xff]   ;;  %v3671_v18 = vld [vmem:[#allocation8 + $0x14c] ss:$16 sps:$4 sm:$0xff]   ;;  %v3669_v19 = vld [vmem:[#allocation8 + $0x148] ss:$16 sps:$4 sm:$0xff]  }
  0x95   :  { %358 = vmatprep.subr.bf16.mxu1 %v3150_v31  ;;  %2021 = vmatpush1.bf16.msra.mxu0 %v3636_v40  ;;  %v3677_v20 = vld [vmem:[#allocation8 + $0x16c] ss:$16 sps:$4 sm:$0xff]   ;;  %v3675_v21 = vld [vmem:[#allocation8 + $0x168] ss:$16 sps:$4 sm:$0xff]   ;;  %v3691_v26 = vld [vmem:[#allocation8 + $0x1c4] ss:$16 sps:$4 sm:$0xff]  }
  0x96   :  { %2022 = vmatprep.subr.bf16.mxu0 %v3637_v41  ;;  %v3683_v22 = vld [vmem:[#allocation8 + $0x18c] ss:$16 sps:$4 sm:$0xff]   ;;  %v3681_v23 = vld [vmem:[#allocation8 + $0x188] ss:$16 sps:$4 sm:$0xff]   ;;  %v3696_v29 = vld [vmem:[#allocation8 + $0x1c0] ss:$16 sps:$4 sm:$0xff]  }
  0x97   :  { %v3689_v24 = vld [vmem:[#allocation8 + $0x1ac] ss:$16 sps:$4 sm:$0xff]   ;;  %v3687_v25 = vld [vmem:[#allocation8 + $0x1a8] ss:$16 sps:$4 sm:$0xff]   ;;  %v3697_v30 = vld [vmem:[#allocation8 + $0x1e4] ss:$16 sps:$4 sm:$0xff]  }
  0x98   :  { %359 = vmatpush1.bf16.msra.mxu1 %v3149_v36  ;;  %v3695_v27 = vld [vmem:[#allocation8 + $0x1cc] ss:$16 sps:$4 sm:$0xff]   ;;  %v3693_v28 = vld [vmem:[#allocation8 + $0x1c8] ss:$16 sps:$4 sm:$0xff]   ;;  %v3702_v33 = vld [vmem:[#allocation8 + $0x1e0] ss:$16 sps:$4 sm:$0xff]   ;;  %v150_v36 = vlaneseq }
  0x99   :  { %397 = vmatprep.subr.bf16.mxu1 %v3144_v37  ;;  %2023 = vmatpush1.bf16.msra.mxu0 %v3642_v44  ;;  %v3701_v31 = vld [vmem:[#allocation8 + $0x1ec] ss:$16 sps:$4 sm:$0xff]   ;;  %v3699_v32 = vld [vmem:[#allocation8 + $0x1e8] ss:$16 sps:$4 sm:$0xff]   ;;  %v3705_v34 = vld [vmem:[#allocation8 + $0x204] ss:$16 sps:$4 sm:$0xff]  }
  0x9a   :  { %2024 = vmatprep.subr.bf16.mxu0 %v3643_v45  ;;  %v3708_v35 = vld [vmem:[#allocation8 + $0x20c] ss:$16 sps:$4 sm:$0xff]   ;;  %v4480_v37 = vshrl.u32 %v150_v36, 7  ;;  %v3759_v36 = vld [vmem:[#allocation8 + $0x324] ss:$16 sps:$4 sm:$0xff]  }
  0x9b   :  { %3155 = vmatmul.mubr.msk.bf16.vlgmr.msra.gmra.mrb[8].mxu1 %vm270_vm0, %v4467_v15  ;;  %v4485_v39 = vld [vmem:[#allocation7] sm:$0xff] }
  0x9c   :  { %398 = vmatpush1.bf16.msra.mxu1 %v3143_v42  ;;  %429 = vmatprep.mubr.bf16.mxu1 %v4312_v0  ;;  %v3672_v0 = vld [vmem:[#allocation8 + $0x140] ss:$16 sps:$4 sm:$0xff]   ;;  %v4483_v38 = vsub.s32 0, %v4480_v37  ;;  %v4488_v40 = vsub.s32 1, %v4480_v37 }
  0x9d   :  { %399 = vmatprep.subr.bf16.mxu1 %v3152_v43  ;;  %2025 = vmatpush1.bf16.msra.mxu0 %v3648_v48  ;;  %v164_v48 = vsub.s32 3, %v4480_v37 }
  0x9e   :  { %2026 = vmatprep.subr.bf16.mxu0 %v3649_v49  ;;  %v153_v41 = vrot.slane %v4485_v39, %v4483_v38  ;;  %v157_v42 = vrot.slane %v4485_v39, %v4488_v40 }
  0xa0   :  { %400 = vmatpush1.bf16.msra.mxu1 %v3151_v46 }
  0xa1   :  { %2176 = vmatprep.subr.bf16.mxu1 %v3611_v47  ;;  %2027 = vmatpush1.bf16.msra.mxu0 %v3654_v52 }
  0xa2   :  { %2028 = vmatprep.subr.bf16.mxu0 %v3655_v53  ;;  %v3703_v53 = vld [vmem:[#allocation8 + $0x200] ss:$16 sps:$4 sm:$0xff]  }
  0xa3   :  { %3156 = vmatmul.mubr.msk.bf16.vlgmr.msra.gmra.mrb[12].mxu1 %vm270_vm0, %v4467_v15  ;;  %v3657_v15 = vld [vmem:[#allocation8 + $0x108] ss:$16 sps:$4 sm:$0xff]  }
  0xa4   :  { %2177 = vmatpush1.bf16.msra.mxu1 %v3609_v50 }
  0xa5   :  { %2178 = vmatprep.subr.bf16.mxu1 %v3617_v51  ;;  %2029 = vmatpush1.bf16.msra.mxu0 %v3660_v56 }
  0xa6   :  { %2030 = vmatprep.subr.bf16.mxu0 %v3661_v57  ;;  %v3711_v57 = vld [vmem:[#allocation8 + $0x224] ss:$16 sps:$4 sm:$0xff]  }
  0xa8   :  { %2179 = vmatpush1.bf16.msra.mxu1 %v3615_v54  ;;  %v3706_v54 = vld [vmem:[#allocation8 + $0x208] ss:$16 sps:$4 sm:$0xff]  }
  0xa9   :  { %2180 = vmatprep.subr.bf16.mxu1 %v3623_v55  ;;  %2031 = vmatpush1.bf16.msra.mxu0 %v3666_v61  ;;  %v165_v55 = vrot.slane %v4485_v39, %v164_v48  ;;  %v3709_v61 = vld [vmem:[#allocation8 + $0x220] ss:$16 sps:$4 sm:$0xff]  }
  0xaa   :  { %2032 = vmatprep.subr.bf16.mxu0 %v3667_v63 }
  0xac   :  { %2181 = vmatpush1.bf16.msra.mxu1 %v3621_v58  ;;  %v3714_v58 = vld [vmem:[#allocation8 + $0x22c] ss:$16 sps:$4 sm:$0xff]  }
  0xad   :  { %2182 = vmatprep.subr.bf16.mxu1 %v3629_v59  ;;  %2033 = vmatpush1.bf16.msra.mxu0 %v3672_v0 }
  0xae   :  { %2034 = vmatprep.subr.bf16.mxu0 %v3673_v1  ;;  %v3717_v1 = vld [vmem:[#allocation8 + $0x244] ss:$16 sps:$4 sm:$0xff]  }
  0xb0   :  { %2183 = vmatpush1.bf16.msra.mxu1 %v3627_v60 }
  0xb1   :  { %2184 = vmatprep.subr.bf16.mxu1 %v3635_v62  ;;  %2035 = vmatpush1.bf16.msra.mxu0 %v3678_v4  ;;  %v3712_v62 = vld [vmem:[#allocation8 + $0x228] ss:$16 sps:$4 sm:$0xff]  }
  0xb2   :  { %2036 = vmatprep.subr.bf16.mxu0 %v3679_v5  ;;  %v3715_v5 = vld [vmem:[#allocation8 + $0x240] ss:$16 sps:$4 sm:$0xff]  }
  0xb4   :  { %2185 = vmatpush1.bf16.msra.mxu1 %v3633_v2  ;;  %v3720_v2 = vld [vmem:[#allocation8 + $0x24c] ss:$16 sps:$4 sm:$0xff]  }
  0xb5   :  { %2186 = vmatprep.subr.bf16.mxu1 %v3641_v3  ;;  %2037 = vmatpush1.bf16.msra.mxu0 %v3684_v8  ;;  %v3723_v8 = vld [vmem:[#allocation8 + $0x264] ss:$16 sps:$4 sm:$0xff]  }
  0xb6   :  { %2038 = vmatprep.subr.bf16.mxu0 %v3685_v9  ;;  %v3726_v9 = vld [vmem:[#allocation8 + $0x26c] ss:$16 sps:$4 sm:$0xff]  }
  0xb8   :  { %2187 = vmatpush1.bf16.msra.mxu1 %v3639_v6  ;;  %v3718_v6 = vld [vmem:[#allocation8 + $0x248] ss:$16 sps:$4 sm:$0xff]  }
  0xb9   :  { %2188 = vmatprep.subr.bf16.mxu1 %v3647_v7  ;;  %2039 = vmatpush1.bf16.msra.mxu0 %v3690_v12  ;;  %v3721_v12 = vld [vmem:[#allocation8 + $0x260] ss:$16 sps:$4 sm:$0xff]  }
  0xba   :  { %2040 = vmatprep.subr.bf16.mxu0 %v3691_v26  ;;  %v3739_v26 = vld [vmem:[#allocation8 + $0x2c0] ss:$16 sps:$4 sm:$0xff]  }
  0xbc   :  { %2189 = vmatpush1.bf16.msra.mxu1 %v3645_v10 }
  0xbd   :  { %2190 = vmatprep.subr.bf16.mxu1 %v3653_v11  ;;  %2041 = vmatpush1.bf16.msra.mxu0 %v3696_v29  ;;  %v3750_v29 = vld [vmem:[#allocation8 + $0x2ec] ss:$16 sps:$4 sm:$0xff]  }
  0xbe   :  { %2042 = vmatprep.subr.bf16.mxu0 %v3697_v30  ;;  %v3745_v30 = vld [vmem:[#allocation8 + $0x2e0] ss:$16 sps:$4 sm:$0xff]  }
  0xc0   :  { %2191 = vmatpush1.bf16.msra.mxu1 %v3651_v13  ;;  %v3724_v13 = vld [vmem:[#allocation8 + $0x268] ss:$16 sps:$4 sm:$0xff]  }
  0xc1   :  { %2192 = vmatprep.subr.bf16.mxu1 %v3659_v14  ;;  %2043 = vmatpush1.bf16.msra.mxu0 %v3702_v33  ;;  %v3756_v33 = vld [vmem:[#allocation8 + $0x30c] ss:$16 sps:$4 sm:$0xff]  }
  0xc2   :  { %2053 = vmatprep.subr.bf16.mxu0 %v3705_v34  ;;  %v3751_v34 = vld [vmem:[#allocation8 + $0x300] ss:$16 sps:$4 sm:$0xff]  }
  0xc4   :  { %2193 = vmatpush1.bf16.msra.mxu1 %v3657_v15  ;;  %v3729_v15 = vld [vmem:[#allocation8 + $0x284] ss:$16 sps:$4 sm:$0xff]  }
  0xc5   :  { %2194 = vmatprep.subr.bf16.mxu1 %v3665_v16  ;;  %v3732_v16 = vld [vmem:[#allocation8 + $0x28c] ss:$16 sps:$4 sm:$0xff]  }
  0xc8   :  { %2195 = vmatpush1.bf16.msra.mxu1 %v3663_v17 }
  0xc9   :  { %2196 = vmatprep.subr.bf16.mxu1 %v3671_v18  ;;  %v3727_v18 = vld [vmem:[#allocation8 + $0x280] ss:$16 sps:$4 sm:$0xff]  }
  0xcc   :  { %2197 = vmatpush1.bf16.msra.mxu1 %v3669_v19  ;;  %v3730_v19 = vld [vmem:[#allocation8 + $0x288] ss:$16 sps:$4 sm:$0xff]  }
  0xcd   :  { %2198 = vmatprep.subr.bf16.mxu1 %v3677_v20  ;;  %v3735_v20 = vld [vmem:[#allocation8 + $0x2a4] ss:$16 sps:$4 sm:$0xff]  }
  0xd0   :  { %2199 = vmatpush1.bf16.msra.mxu1 %v3675_v21  ;;  %v3738_v21 = vld [vmem:[#allocation8 + $0x2ac] ss:$16 sps:$4 sm:$0xff]  }
  0xd1   :  { %2200 = vmatprep.subr.bf16.mxu1 %v3683_v22  ;;  %v3733_v22 = vld [vmem:[#allocation8 + $0x2a0] ss:$16 sps:$4 sm:$0xff]  }
  0xd4   :  { %2201 = vmatpush1.bf16.msra.mxu1 %v3681_v23  ;;  %v3736_v23 = vld [vmem:[#allocation8 + $0x2a8] ss:$16 sps:$4 sm:$0xff]  }
  0xd5   :  { %2202 = vmatprep.subr.bf16.mxu1 %v3689_v24  ;;  %v3741_v24 = vld [vmem:[#allocation8 + $0x2c4] ss:$16 sps:$4 sm:$0xff]  }
  0xd8   :  { %2203 = vmatpush1.bf16.msra.mxu1 %v3687_v25  ;;  %v3744_v25 = vld [vmem:[#allocation8 + $0x2cc] ss:$16 sps:$4 sm:$0xff]  }
  0xd9   :  { %2204 = vmatprep.subr.bf16.mxu1 %v3695_v27  ;;  %v3742_v27 = vld [vmem:[#allocation8 + $0x2c8] ss:$16 sps:$4 sm:$0xff]  }
  0xdc   :  { %2205 = vmatpush1.bf16.msra.mxu1 %v3693_v28  ;;  %v3747_v28 = vld [vmem:[#allocation8 + $0x2e4] ss:$16 sps:$4 sm:$0xff]  }
  0xdd   :  { %2206 = vmatprep.subr.bf16.mxu1 %v3701_v31  ;;  %v3748_v31 = vld [vmem:[#allocation8 + $0x2e8] ss:$16 sps:$4 sm:$0xff]  }
  0xe0   :  { %2207 = vmatpush1.bf16.msra.mxu1 %v3699_v32  ;;  %v3753_v32 = vld [vmem:[#allocation8 + $0x304] ss:$16 sps:$4 sm:$0xff]  }
  0xe1   :  { %2217 = vmatprep.subr.bf16.mxu1 %v3708_v35  ;;  %v3754_v35 = vld [vmem:[#allocation8 + $0x308] ss:$16 sps:$4 sm:$0xff]  }
 0x15e   :  { %v308_v43 = vpop.f32.mrb[0].mxu1 }
 0x15f   :  { %v309_v44 = vadd.f32 %v308_v43, %v153_v41  ;;  %v310_v45 = vpop.f32.mrb[1].mxu1  ;;  %v3762_v41 = vld [vmem:[#allocation8 + $0x32c] ss:$16 sps:$4 sm:$0xff]   ;;  %v3760_v43 = vld [vmem:[#allocation8 + $0x328] ss:$16 sps:$4 sm:$0xff]  }
 0x160   :  { %v311_v46 = vadd.f32 %v310_v45, %v157_v42  ;;  %v312_v47 = vpop.f32.mrb[2].mxu1  ;;  %v3757_v42 = vld [vmem:[#allocation8 + $0x320] ss:$16 sps:$4 sm:$0xff]   ;;  %v3768_v45 = vld [vmem:[#allocation8 + $0x34c] ss:$16 sps:$4 sm:$0xff]  }
 0x161   :  { %v438_v49 = vmax.f32 %v309_v44, 0.0  ;;  %v313_v50 = vpop.f32.mrb[3].mxu1  ;;  %v3765_v44 = vld [vmem:[#allocation8 + $0x344] ss:$16 sps:$4 sm:$0xff]   ;;  %v3766_v47 = vld [vmem:[#allocation8 + $0x348] ss:$16 sps:$4 sm:$0xff]  }
 0x162   :  { %v439_v51 = vmax.f32 %v311_v46, 0.0  ;;  %v3763_v46 = vld [vmem:[#allocation8 + $0x340] ss:$16 sps:$4 sm:$0xff]   ;;  %v3774_v50 = vld [vmem:[#allocation8 + $0x36c] ss:$16 sps:$4 sm:$0xff]  }
 0x163   :  { %v446_v56 = vpack.c.bf16 %v438_v49, %v438_v49  ;;  %v3771_v49 = vld [vmem:[#allocation8 + $0x364] ss:$16 sps:$4 sm:$0xff]  }
 0x164   :  { %v447_v52 = vpack.c.bf16 %v439_v51, %v439_v51  ;;  %v3769_v51 = vld [vmem:[#allocation8 + $0x360] ss:$16 sps:$4 sm:$0xff]  }
 0x166   :  { %2044 = vmatprep.mubr.bf16.mxu0 %v447_v52  ;;  %2208 = vmatprep.mubr.bf16.mxu1 %v447_v52  ;;  %v4498_v59 = vpop.f32.mrb[4].mxu1  ;;  %v3772_v52 = vld [vmem:[#allocation8 + $0x368] ss:$16 sps:$4 sm:$0xff]  }
 0x167   :  { %2045 = vmatmul.mubr.bf16.vlgmr.msra.gmra.mrb[0].mxu0 %v446_v56  ;;  %2209 = vmatmul.mubr.bf16.vlgmr.msra.gmra.mrb[16].mxu1 %v446_v56  ;;  %v351_v60 = vpop.f32.mrb[5].mxu1  ;;  %v3775_v56 = vld [vmem:[#allocation8 + $0x380] ss:$16 sps:$4 sm:$0xff]  }
 0x168   :  { %2054 = vmatpush1.bf16.msra.mxu0 %v3703_v53  ;;  %2218 = vmatpush1.bf16.msra.mxu1 %v3706_v54  ;;  %v352_v63 = vadd.f32 %v351_v60, %v165_v55  ;;  %v353_v0 = vpop.f32.mrb[6].mxu1  ;;  %v3777_v53 = vld [vmem:[#allocation8 + $0x384] ss:$16 sps:$4 sm:$0xff]   ;;  %v3780_v54 = vld [vmem:[#allocation8 + $0x38c] ss:$16 sps:$4 sm:$0xff]   ;;  %v160_v55 = vsub.s32 2, %v4480_v37 }
 0x169   :  { %2055 = vmatprep.subr.bf16.mxu0 %v3711_v57  ;;  %2219 = vmatprep.subr.bf16.mxu1 %v3714_v58  ;;  %v354_v3 = vpop.f32.mrb[7].mxu1  ;;  %v3778_v57 = vld [vmem:[#allocation8 + $0x388] ss:$16 sps:$4 sm:$0xff]   ;;  %v3783_v58 = vld [vmem:[#allocation8 + $0x3a4] ss:$16 sps:$4 sm:$0xff]  }
 0x16a   :  { %v441_v4 = vmax.f32 %v352_v63, 0.0  ;;  %v3786_v60 = vld [vmem:[#allocation8 + $0x3ac] ss:$16 sps:$4 sm:$0xff]   ;;  %v3781_v63 = vld [vmem:[#allocation8 + $0x3a0] ss:$16 sps:$4 sm:$0xff]  }
 0x16b   :  { %v3784_v0 = vld [vmem:[#allocation8 + $0x3a8] ss:$16 sps:$4 sm:$0xff]   ;;  %v3792_v3 = vld [vmem:[#allocation8 + $0x3cc] ss:$16 sps:$4 sm:$0xff]  }
 0x16c   :  { %2056 = vmatpush1.bf16.msra.mxu0 %v3709_v61  ;;  %2220 = vmatpush1.bf16.msra.mxu1 %v3712_v62  ;;  %v449_v7 = vpack.c.bf16 %v441_v4, %v441_v4  ;;  %v172_v61 = vsub.s32 5, %v4480_v37  ;;  %v161_v62 = vrot.slane %v4485_v39, %v160_v55 }
 0x16d   :  { %2057 = vmatprep.subr.bf16.mxu0 %v3717_v1  ;;  %2221 = vmatprep.subr.bf16.mxu1 %v3720_v2  ;;  %v3789_v2 = vld [vmem:[#allocation8 + $0x3c4] ss:$16 sps:$4 sm:$0xff]  }
 0x16e   :  { %2085 = vmatprep.mubr.bf16.mxu0 %v449_v7  ;;  %2249 = vmatprep.mubr.bf16.mxu1 %v449_v7  ;;  %v4500_v10 = vpop.f32.mrb[8].mxu1  ;;  %v350_v7 = vadd.f32 %v4498_v59, %v161_v62  ;;  %v3804_v59 = vld [vmem:[#allocation8 + $0x40c] ss:$16 sps:$4 sm:$0xff]   ;;  %v3850_v62 = vld [vmem:[#allocation8 + $0x508] ss:$16 sps:$4 sm:$0xff]  }
 0x16f   :  { %v4502_v11 = vpop.f32.mrb[9].mxu1 }
 0x170   :  { %2058 = vmatpush1.bf16.msra.mxu0 %v3715_v5  ;;  %2222 = vmatpush1.bf16.msra.mxu1 %v3718_v6  ;;  %v394_v14 = vpop.f32.mrb[10].mxu1  ;;  %v173_v5 = vrot.slane %v4485_v39, %v172_v61  ;;  %v3847_v61 = vld [vmem:[#allocation8 + $0x500] ss:$16 sps:$4 sm:$0xff]  }
 0x171   :  { %2059 = vmatprep.subr.bf16.mxu0 %v3723_v8  ;;  %2223 = vmatprep.subr.bf16.mxu1 %v3726_v9  ;;  %v395_v17 = vpop.f32.mrb[11].mxu1  ;;  %v3787_v9 = vld [vmem:[#allocation8 + $0x3c0] ss:$16 sps:$4 sm:$0xff]   ;;  %v3798_v14 = vld [vmem:[#allocation8 + $0x3ec] ss:$16 sps:$4 sm:$0xff]  }
 0x172   :  { %v3793_v17 = vld [vmem:[#allocation8 + $0x3e0] ss:$16 sps:$4 sm:$0xff]  }
 0x174   :  { %2060 = vmatpush1.bf16.msra.mxu0 %v3721_v12  ;;  %2224 = vmatpush1.bf16.msra.mxu1 %v3724_v13  ;;  %v3790_v12 = vld [vmem:[#allocation8 + $0x3c8] ss:$16 sps:$4 sm:$0xff]   ;;  %v3795_v13 = vld [vmem:[#allocation8 + $0x3e4] ss:$16 sps:$4 sm:$0xff]  }
 0x175   :  { %2061 = vmatprep.subr.bf16.mxu0 %v3729_v15  ;;  %2225 = vmatprep.subr.bf16.mxu1 %v3732_v16  ;;  %v393_v15 = vadd.f32 %v4502_v11, %v173_v5  ;;  %v440_v16 = vmax.f32 %v350_v7, 0.0  ;;  %v3861_v5 = vld [vmem:[#allocation8 + $0x544] ss:$16 sps:$4 sm:$0xff]   ;;  %v3859_v7 = vld [vmem:[#allocation8 + $0x540] ss:$16 sps:$4 sm:$0xff]  }
 0x176   :  { %v4509_v1 = vpop.f32.mrb[12].mxu1 }
 0x177   :  { %v4511_v4 = vpop.f32.mrb[13].mxu1 }
 0x178   :  { %2062 = vmatpush1.bf16.msra.mxu0 %v3727_v18  ;;  %2226 = vmatpush1.bf16.msra.mxu1 %v3730_v19  ;;  %v435_v6 = vpop.f32.mrb[14].mxu1  ;;  %v3796_v18 = vld [vmem:[#allocation8 + $0x3e8] ss:$16 sps:$4 sm:$0xff]   ;;  %v3801_v19 = vld [vmem:[#allocation8 + $0x404] ss:$16 sps:$4 sm:$0xff]  }
 0x179   :  { %2063 = vmatprep.subr.bf16.mxu0 %v3735_v20  ;;  %2227 = vmatprep.subr.bf16.mxu1 %v3738_v21  ;;  %v436_v8 = vpop.f32.mrb[15].mxu1  ;;  %v443_v20 = vmax.f32 %v393_v15, 0.0  ;;  %v448_v21 = vpack.c.bf16 %v440_v16, %v440_v16  ;;  %v3864_v6 = vld [vmem:[#allocation8 + $0x54c] ss:$16 sps:$4 sm:$0xff]   ;;  %v3873_v15 = vld [vmem:[#allocation8 + $0x584] ss:$16 sps:$4 sm:$0xff]  }
 0x17a   :  { %v3862_v8 = vld [vmem:[#allocation8 + $0x548] ss:$16 sps:$4 sm:$0xff]   ;;  %v3876_v16 = vld [vmem:[#allocation8 + $0x58c] ss:$16 sps:$4 sm:$0xff]  }
 0x17b   :  { %v451_v11 = vpack.c.bf16 %v443_v20, %v443_v20  ;;  %v3882_v20 = vld [vmem:[#allocation8 + $0x5ac] ss:$16 sps:$4 sm:$0xff]  }
 0x17c   :  { %2064 = vmatpush1.bf16.msra.mxu0 %v3733_v22  ;;  %2228 = vmatpush1.bf16.msra.mxu1 %v3736_v23  ;;  %v3799_v22 = vld [vmem:[#allocation8 + $0x400] ss:$16 sps:$4 sm:$0xff]   ;;  %v3802_v23 = vld [vmem:[#allocation8 + $0x408] ss:$16 sps:$4 sm:$0xff]  }
 0x17d   :  { %2065 = vmatprep.subr.bf16.mxu0 %v3741_v24  ;;  %2229 = vmatprep.subr.bf16.mxu1 %v3744_v25  ;;  %v3807_v24 = vld [vmem:[#allocation8 + $0x424] ss:$16 sps:$4 sm:$0xff]   ;;  %v3810_v25 = vld [vmem:[#allocation8 + $0x42c] ss:$16 sps:$4 sm:$0xff]  }
 0x180   :  { %2066 = vmatpush1.bf16.msra.mxu0 %v3739_v26  ;;  %2230 = vmatpush1.bf16.msra.mxu1 %v3742_v27  ;;  %v3805_v26 = vld [vmem:[#allocation8 + $0x420] ss:$16 sps:$4 sm:$0xff]   ;;  %v3808_v27 = vld [vmem:[#allocation8 + $0x428] ss:$16 sps:$4 sm:$0xff]  }
 0x181   :  { %2067 = vmatprep.subr.bf16.mxu0 %v3747_v28  ;;  %2231 = vmatprep.subr.bf16.mxu1 %v3750_v29  ;;  %v3813_v28 = vld [vmem:[#allocation8 + $0x444] ss:$16 sps:$4 sm:$0xff]   ;;  %v3816_v29 = vld [vmem:[#allocation8 + $0x44c] ss:$16 sps:$4 sm:$0xff]  }
 0x184   :  { %2068 = vmatpush1.bf16.msra.mxu0 %v3745_v30  ;;  %2232 = vmatpush1.bf16.msra.mxu1 %v3748_v31  ;;  %v3811_v30 = vld [vmem:[#allocation8 + $0x440] ss:$16 sps:$4 sm:$0xff]   ;;  %v3814_v31 = vld [vmem:[#allocation8 + $0x448] ss:$16 sps:$4 sm:$0xff]  }
 0x185   :  { %2069 = vmatprep.subr.bf16.mxu0 %v3753_v32  ;;  %2233 = vmatprep.subr.bf16.mxu1 %v3756_v33  ;;  %v3819_v32 = vld [vmem:[#allocation8 + $0x464] ss:$16 sps:$4 sm:$0xff]   ;;  %v3822_v33 = vld [vmem:[#allocation8 + $0x46c] ss:$16 sps:$4 sm:$0xff]  }
 0x188   :  { %2070 = vmatpush1.bf16.msra.mxu0 %v3751_v34  ;;  %2234 = vmatpush1.bf16.msra.mxu1 %v3754_v35  ;;  %v3817_v34 = vld [vmem:[#allocation8 + $0x460] ss:$16 sps:$4 sm:$0xff]   ;;  %v3820_v35 = vld [vmem:[#allocation8 + $0x468] ss:$16 sps:$4 sm:$0xff]  }
 0x189   :  { %2071 = vmatprep.subr.bf16.mxu0 %v3759_v36  ;;  %2235 = vmatprep.subr.bf16.mxu1 %v3762_v41  ;;  %v3825_v36 = vld [vmem:[#allocation8 + $0x484] ss:$16 sps:$4 sm:$0xff]   ;;  %v3828_v41 = vld [vmem:[#allocation8 + $0x48c] ss:$16 sps:$4 sm:$0xff]  }
 0x18c   :  { %2072 = vmatpush1.bf16.msra.mxu0 %v3757_v42  ;;  %2236 = vmatpush1.bf16.msra.mxu1 %v3760_v43  ;;  %v3823_v42 = vld [vmem:[#allocation8 + $0x480] ss:$16 sps:$4 sm:$0xff]   ;;  %v3826_v43 = vld [vmem:[#allocation8 + $0x488] ss:$16 sps:$4 sm:$0xff]  }
 0x18d   :  { %2073 = vmatprep.subr.bf16.mxu0 %v3765_v44  ;;  %2237 = vmatprep.subr.bf16.mxu1 %v3768_v45  ;;  %v3831_v44 = vld [vmem:[#allocation8 + $0x4a4] ss:$16 sps:$4 sm:$0xff]   ;;  %v3834_v45 = vld [vmem:[#allocation8 + $0x4ac] ss:$16 sps:$4 sm:$0xff]  }
 0x190   :  { %2074 = vmatpush1.bf16.msra.mxu0 %v3763_v46  ;;  %2238 = vmatpush1.bf16.msra.mxu1 %v3766_v47  ;;  %v3829_v46 = vld [vmem:[#allocation8 + $0x4a0] ss:$16 sps:$4 sm:$0xff]   ;;  %v3832_v47 = vld [vmem:[#allocation8 + $0x4a8] ss:$16 sps:$4 sm:$0xff]  }
 0x191   :  { %2075 = vmatprep.subr.bf16.mxu0 %v3771_v49  ;;  %2239 = vmatprep.subr.bf16.mxu1 %v3774_v50  ;;  %v3837_v49 = vld [vmem:[#allocation8 + $0x4c4] ss:$16 sps:$4 sm:$0xff]   ;;  %v3840_v50 = vld [vmem:[#allocation8 + $0x4cc] ss:$16 sps:$4 sm:$0xff]  }
 0x194   :  { %2076 = vmatpush1.bf16.msra.mxu0 %v3769_v51  ;;  %2240 = vmatpush1.bf16.msra.mxu1 %v3772_v52  ;;  %v3835_v51 = vld [vmem:[#allocation8 + $0x4c0] ss:$16 sps:$4 sm:$0xff]   ;;  %v3838_v52 = vld [vmem:[#allocation8 + $0x4c8] ss:$16 sps:$4 sm:$0xff]  }
 0x195   :  { %2077 = vmatprep.subr.bf16.mxu0 %v3777_v53  ;;  %2241 = vmatprep.subr.bf16.mxu1 %v3780_v54  ;;  %v3843_v53 = vld [vmem:[#allocation8 + $0x4e4] ss:$16 sps:$4 sm:$0xff]   ;;  %v3846_v54 = vld [vmem:[#allocation8 + $0x4ec] ss:$16 sps:$4 sm:$0xff]  }
 0x198   :  { %2078 = vmatpush1.bf16.msra.mxu0 %v3775_v56  ;;  %2242 = vmatpush1.bf16.msra.mxu1 %v3778_v57  ;;  %v3841_v56 = vld [vmem:[#allocation8 + $0x4e0] ss:$16 sps:$4 sm:$0xff]   ;;  %v3844_v57 = vld [vmem:[#allocation8 + $0x4e8] ss:$16 sps:$4 sm:$0xff]  }
 0x199   :  { %2079 = vmatprep.subr.bf16.mxu0 %v3783_v58  ;;  %2243 = vmatprep.subr.bf16.mxu1 %v3786_v60  ;;  %v3849_v58 = vld [vmem:[#allocation8 + $0x504] ss:$16 sps:$4 sm:$0xff]   ;;  %v3852_v60 = vld [vmem:[#allocation8 + $0x50c] ss:$16 sps:$4 sm:$0xff]  }
 0x19c   :  { %2080 = vmatpush1.bf16.msra.mxu0 %v3781_v63  ;;  %2244 = vmatpush1.bf16.msra.mxu1 %v3784_v0  ;;  %v3855_v63 = vld [vmem:[#allocation8 + $0x524] ss:$16 sps:$4 sm:$0xff]   ;;  %v3858_v0 = vld [vmem:[#allocation8 + $0x52c] ss:$16 sps:$4 sm:$0xff]  }
 0x19d   :  { %2081 = vmatprep.subr.bf16.mxu0 %v3789_v2  ;;  %2245 = vmatprep.subr.bf16.mxu1 %v3792_v3  ;;  %v3853_v2 = vld [vmem:[#allocation8 + $0x520] ss:$16 sps:$4 sm:$0xff]   ;;  %v3856_v3 = vld [vmem:[#allocation8 + $0x528] ss:$16 sps:$4 sm:$0xff]  }
 0x1a0   :  { %2082 = vmatpush1.bf16.msra.mxu0 %v3787_v9  ;;  %2246 = vmatpush1.bf16.msra.mxu1 %v3790_v12  ;;  %v3867_v9 = vld [vmem:[#allocation8 + $0x564] ss:$16 sps:$4 sm:$0xff]   ;;  %v3870_v12 = vld [vmem:[#allocation8 + $0x56c] ss:$16 sps:$4 sm:$0xff]  }
 0x1a1   :  { %2083 = vmatprep.subr.bf16.mxu0 %v3795_v13  ;;  %2247 = vmatprep.subr.bf16.mxu1 %v3798_v14  ;;  %v3865_v13 = vld [vmem:[#allocation8 + $0x560] ss:$16 sps:$4 sm:$0xff]   ;;  %v3868_v14 = vld [vmem:[#allocation8 + $0x568] ss:$16 sps:$4 sm:$0xff]  }
 0x1a4   :  { %2084 = vmatpush1.bf16.msra.mxu0 %v3793_v17  ;;  %2248 = vmatpush1.bf16.msra.mxu1 %v3796_v18  ;;  %v168_v17 = vsub.s32 4, %v4480_v37  ;;  %v3871_v18 = vld [vmem:[#allocation8 + $0x580] ss:$16 sps:$4 sm:$0xff]  }
 0x1a5   :  { %2094 = vmatprep.subr.bf16.mxu0 %v3801_v19  ;;  %2258 = vmatprep.subr.bf16.mxu1 %v3804_v59  ;;  %v3874_v19 = vld [vmem:[#allocation8 + $0x588] ss:$16 sps:$4 sm:$0xff]   ;;  %v3879_v59 = vld [vmem:[#allocation8 + $0x5a4] ss:$16 sps:$4 sm:$0xff]  }
 0x1a7   :  { %2086 = vmatmul.mubr.bf16.vlgmr.msra.gmra.mrb[0].mxu0 %v448_v21  ;;  %2250 = vmatmul.mubr.bf16.vlgmr.msra.gmra.mrb[16].mxu1 %v448_v21  ;;  %v180_v21 = vsub.s32 7, %v4480_v37 }
 0x1a8   :  { %2095 = vmatpush1.bf16.msra.mxu0 %v3799_v22  ;;  %2259 = vmatpush1.bf16.msra.mxu1 %v3802_v23  ;;  %v169_v22 = vrot.slane %v4485_v39, %v168_v17  ;;  %v3877_v23 = vld [vmem:[#allocation8 + $0x5a0] ss:$16 sps:$4 sm:$0xff]   ;;  %v3948_v17 = vld [vmem:[#allocation8 + $0x70c] ss:$16 sps:$4 sm:$0xff]  }
 0x1a9   :  { %2096 = vmatprep.subr.bf16.mxu0 %v3807_v24  ;;  %2260 = vmatprep.subr.bf16.mxu1 %v3810_v25  ;;  %v3880_v24 = vld [vmem:[#allocation8 + $0x5a8] ss:$16 sps:$4 sm:$0xff]   ;;  %v3885_v25 = vld [vmem:[#allocation8 + $0x5c4] ss:$16 sps:$4 sm:$0xff]  }
 0x1aa   :  { %2126 = vmatprep.mubr.bf16.mxu0 %v451_v11  ;;  %2290 = vmatprep.mubr.bf16.mxu1 %v451_v11  ;;  %v3888_v11 = vld [vmem:[#allocation8 + $0x5cc] ss:$16 sps:$4 sm:$0xff]  }
 0x1ac   :  { %2097 = vmatpush1.bf16.msra.mxu0 %v3805_v26  ;;  %2261 = vmatpush1.bf16.msra.mxu1 %v3808_v27  ;;  %v181_v26 = vrot.slane %v4485_v39, %v180_v21  ;;  %v391_v27 = vadd.f32 %v4500_v10, %v169_v22  ;;  %v3949_v21 = vld [vmem:[#allocation8 + $0x720] ss:$16 sps:$4 sm:$0xff]   ;;  %v3952_v22 = vld [vmem:[#allocation8 + $0x728] ss:$16 sps:$4 sm:$0xff]  }
 0x1ad   :  { %2098 = vmatprep.subr.bf16.mxu0 %v3813_v28  ;;  %2262 = vmatprep.subr.bf16.mxu1 %v3816_v29  ;;  %v3883_v28 = vld [vmem:[#allocation8 + $0x5c0] ss:$16 sps:$4 sm:$0xff]   ;;  %v3886_v29 = vld [vmem:[#allocation8 + $0x5c8] ss:$16 sps:$4 sm:$0xff]  }
 0x1b0   :  { %2099 = vmatpush1.bf16.msra.mxu0 %v3811_v30  ;;  %2263 = vmatpush1.bf16.msra.mxu1 %v3814_v31  ;;  %v3891_v30 = vld [vmem:[#allocation8 + $0x5e4] ss:$16 sps:$4 sm:$0xff]   ;;  %v3894_v31 = vld [vmem:[#allocation8 + $0x5ec] ss:$16 sps:$4 sm:$0xff]  }
 0x1b1   :  { %2100 = vmatprep.subr.bf16.mxu0 %v3819_v32  ;;  %2264 = vmatprep.subr.bf16.mxu1 %v3822_v33  ;;  %v434_v32 = vadd.f32 %v4511_v4, %v181_v26  ;;  %v442_v33 = vmax.f32 %v391_v27, 0.0  ;;  %v3963_v26 = vld [vmem:[#allocation8 + $0x764] ss:$16 sps:$4 sm:$0xff]   ;;  %v3966_v27 = vld [vmem:[#allocation8 + $0x76c] ss:$16 sps:$4 sm:$0xff]  }
 0x1b3   :  { %v445_v10 = vmax.f32 %v434_v32, 0.0  ;;  %v3967_v32 = vld [vmem:[#allocation8 + $0x780] ss:$16 sps:$4 sm:$0xff]  }
 0x1b4   :  { %2101 = vmatpush1.bf16.msra.mxu0 %v3817_v34  ;;  %2265 = vmatpush1.bf16.msra.mxu1 %v3820_v35  ;;  %v3889_v34 = vld [vmem:[#allocation8 + $0x5e0] ss:$16 sps:$4 sm:$0xff]   ;;  %v3892_v35 = vld [vmem:[#allocation8 + $0x5e8] ss:$16 sps:$4 sm:$0xff]  }
 0x1b5   :  { %2102 = vmatprep.subr.bf16.mxu0 %v3825_v36  ;;  %2266 = vmatprep.subr.bf16.mxu1 %v3828_v41  ;;  %v3897_v36 = vld [vmem:[#allocation8 + $0x604] ss:$16 sps:$4 sm:$0xff]   ;;  %v3900_v41 = vld [vmem:[#allocation8 + $0x60c] ss:$16 sps:$4 sm:$0xff]   ;;  %v453_v4 = vpack.c.bf16 %v445_v10, %v445_v10  ;;  %v3976_v10 = vld [vmem:[#allocation8 + $0x7a8] ss:$16 sps:$4 sm:$0xff]  }
 0x1b8   :  { %2103 = vmatpush1.bf16.msra.mxu0 %v3823_v42  ;;  %2267 = vmatpush1.bf16.msra.mxu1 %v3826_v43  ;;  %v450_v42 = vpack.c.bf16 %v442_v33, %v442_v33  ;;  %v3895_v43 = vld [vmem:[#allocation8 + $0x600] ss:$16 sps:$4 sm:$0xff]   ;;  %v3970_v33 = vld [vmem:[#allocation8 + $0x788] ss:$16 sps:$4 sm:$0xff]  }
 0x1b9   :  { %2104 = vmatprep.subr.bf16.mxu0 %v3831_v44  ;;  %2268 = vmatprep.subr.bf16.mxu1 %v3834_v45  ;;  %v3898_v44 = vld [vmem:[#allocation8 + $0x608] ss:$16 sps:$4 sm:$0xff]   ;;  %v3903_v45 = vld [vmem:[#allocation8 + $0x624] ss:$16 sps:$4 sm:$0xff]  }
 0x1bc   :  { %2105 = vmatpush1.bf16.msra.mxu0 %v3829_v46  ;;  %2269 = vmatpush1.bf16.msra.mxu1 %v3832_v47  ;;  %v3906_v46 = vld [vmem:[#allocation8 + $0x62c] ss:$16 sps:$4 sm:$0xff]   ;;  %v3901_v47 = vld [vmem:[#allocation8 + $0x620] ss:$16 sps:$4 sm:$0xff]  }
 0x1bd   :  { %2106 = vmatprep.subr.bf16.mxu0 %v3837_v49  ;;  %2270 = vmatprep.subr.bf16.mxu1 %v3840_v50  ;;  %v3904_v49 = vld [vmem:[#allocation8 + $0x628] ss:$16 sps:$4 sm:$0xff]   ;;  %v3909_v50 = vld [vmem:[#allocation8 + $0x644] ss:$16 sps:$4 sm:$0xff]  }
 0x1c0   :  { %2107 = vmatpush1.bf16.msra.mxu0 %v3835_v51  ;;  %2271 = vmatpush1.bf16.msra.mxu1 %v3838_v52  ;;  %v3912_v51 = vld [vmem:[#allocation8 + $0x64c] ss:$16 sps:$4 sm:$0xff]   ;;  %v3907_v52 = vld [vmem:[#allocation8 + $0x640] ss:$16 sps:$4 sm:$0xff]  }
 0x1c1   :  { %2108 = vmatprep.subr.bf16.mxu0 %v3843_v53  ;;  %2272 = vmatprep.subr.bf16.mxu1 %v3846_v54  ;;  %v3910_v53 = vld [vmem:[#allocation8 + $0x648] ss:$16 sps:$4 sm:$0xff]   ;;  %v3915_v54 = vld [vmem:[#allocation8 + $0x664] ss:$16 sps:$4 sm:$0xff]  }
 0x1c4   :  { %2109 = vmatpush1.bf16.msra.mxu0 %v3841_v56  ;;  %2273 = vmatpush1.bf16.msra.mxu1 %v3844_v57  ;;  %v3918_v56 = vld [vmem:[#allocation8 + $0x66c] ss:$16 sps:$4 sm:$0xff]   ;;  %v3913_v57 = vld [vmem:[#allocation8 + $0x660] ss:$16 sps:$4 sm:$0xff]  }
 0x1c5   :  { %2110 = vmatprep.subr.bf16.mxu0 %v3849_v58  ;;  %2274 = vmatprep.subr.bf16.mxu1 %v3852_v60  ;;  %v3916_v58 = vld [vmem:[#allocation8 + $0x668] ss:$16 sps:$4 sm:$0xff]   ;;  %v3921_v60 = vld [vmem:[#allocation8 + $0x684] ss:$16 sps:$4 sm:$0xff]  }
 0x1c8   :  { %2111 = vmatpush1.bf16.msra.mxu0 %v3847_v61  ;;  %2275 = vmatpush1.bf16.msra.mxu1 %v3850_v62  ;;  %v3924_v61 = vld [vmem:[#allocation8 + $0x68c] ss:$16 sps:$4 sm:$0xff]   ;;  %v3919_v62 = vld [vmem:[#allocation8 + $0x680] ss:$16 sps:$4 sm:$0xff]  }
 0x1c9   :  { %2112 = vmatprep.subr.bf16.mxu0 %v3855_v63  ;;  %2276 = vmatprep.subr.bf16.mxu1 %v3858_v0  ;;  %v3922_v63 = vld [vmem:[#allocation8 + $0x688] ss:$16 sps:$4 sm:$0xff]   ;;  %v3927_v0 = vld [vmem:[#allocation8 + $0x6a4] ss:$16 sps:$4 sm:$0xff]  }
 0x1cc   :  { %2113 = vmatpush1.bf16.msra.mxu0 %v3853_v2  ;;  %2277 = vmatpush1.bf16.msra.mxu1 %v3856_v3  ;;  %v3930_v2 = vld [vmem:[#allocation8 + $0x6ac] ss:$16 sps:$4 sm:$0xff]   ;;  %v3925_v3 = vld [vmem:[#allocation8 + $0x6a0] ss:$16 sps:$4 sm:$0xff]  }
 0x1cd   :  { %2114 = vmatprep.subr.bf16.mxu0 %v3861_v5  ;;  %2278 = vmatprep.subr.bf16.mxu1 %v3864_v6  ;;  %v3928_v5 = vld [vmem:[#allocation8 + $0x6a8] ss:$16 sps:$4 sm:$0xff]   ;;  %v3933_v6 = vld [vmem:[#allocation8 + $0x6c4] ss:$16 sps:$4 sm:$0xff]  }
 0x1d0   :  { %2115 = vmatpush1.bf16.msra.mxu0 %v3859_v7  ;;  %2279 = vmatpush1.bf16.msra.mxu1 %v3862_v8  ;;  %v3936_v7 = vld [vmem:[#allocation8 + $0x6cc] ss:$16 sps:$4 sm:$0xff]   ;;  %v3931_v8 = vld [vmem:[#allocation8 + $0x6c0] ss:$16 sps:$4 sm:$0xff]  }
 0x1d1   :  { %2116 = vmatprep.subr.bf16.mxu0 %v3867_v9  ;;  %2280 = vmatprep.subr.bf16.mxu1 %v3870_v12  ;;  %v3934_v9 = vld [vmem:[#allocation8 + $0x6c8] ss:$16 sps:$4 sm:$0xff]   ;;  %v3939_v12 = vld [vmem:[#allocation8 + $0x6e4] ss:$16 sps:$4 sm:$0xff]  }
 0x1d4   :  { %2117 = vmatpush1.bf16.msra.mxu0 %v3865_v13  ;;  %2281 = vmatpush1.bf16.msra.mxu1 %v3868_v14  ;;  %v3942_v13 = vld [vmem:[#allocation8 + $0x6ec] ss:$16 sps:$4 sm:$0xff]   ;;  %v3937_v14 = vld [vmem:[#allocation8 + $0x6e0] ss:$16 sps:$4 sm:$0xff]  }
 0x1d5   :  { %2118 = vmatprep.subr.bf16.mxu0 %v3873_v15  ;;  %2282 = vmatprep.subr.bf16.mxu1 %v3876_v16  ;;  %v3940_v15 = vld [vmem:[#allocation8 + $0x6e8] ss:$16 sps:$4 sm:$0xff]   ;;  %v3945_v16 = vld [vmem:[#allocation8 + $0x704] ss:$16 sps:$4 sm:$0xff]  }
 0x1d8   :  { %2119 = vmatpush1.bf16.msra.mxu0 %v3871_v18  ;;  %2283 = vmatpush1.bf16.msra.mxu1 %v3874_v19  ;;  %v3943_v18 = vld [vmem:[#allocation8 + $0x700] ss:$16 sps:$4 sm:$0xff]   ;;  %v3946_v19 = vld [vmem:[#allocation8 + $0x708] ss:$16 sps:$4 sm:$0xff]  }
 0x1d9   :  { %2120 = vmatprep.subr.bf16.mxu0 %v3879_v59  ;;  %2284 = vmatprep.subr.bf16.mxu1 %v3882_v20  ;;  %v3951_v59 = vld [vmem:[#allocation8 + $0x724] ss:$16 sps:$4 sm:$0xff]   ;;  %v3954_v20 = vld [vmem:[#allocation8 + $0x72c] ss:$16 sps:$4 sm:$0xff]  }
 0x1dc   :  { %2121 = vmatpush1.bf16.msra.mxu0 %v3877_v23  ;;  %2285 = vmatpush1.bf16.msra.mxu1 %v3880_v24  ;;  %v3957_v23 = vld [vmem:[#allocation8 + $0x744] ss:$16 sps:$4 sm:$0xff]   ;;  %v3960_v24 = vld [vmem:[#allocation8 + $0x74c] ss:$16 sps:$4 sm:$0xff]  }
 0x1dd   :  { %2122 = vmatprep.subr.bf16.mxu0 %v3885_v25  ;;  %2286 = vmatprep.subr.bf16.mxu1 %v3888_v11  ;;  %v3955_v25 = vld [vmem:[#allocation8 + $0x740] ss:$16 sps:$4 sm:$0xff]   ;;  %v3958_v11 = vld [vmem:[#allocation8 + $0x748] ss:$16 sps:$4 sm:$0xff]  }
 0x1e0   :  { %2123 = vmatpush1.bf16.msra.mxu0 %v3883_v28  ;;  %2287 = vmatpush1.bf16.msra.mxu1 %v3886_v29  ;;  %v3961_v28 = vld [vmem:[#allocation8 + $0x760] ss:$16 sps:$4 sm:$0xff]   ;;  %v3964_v29 = vld [vmem:[#allocation8 + $0x768] ss:$16 sps:$4 sm:$0xff]  }
 0x1e1   :  { %2124 = vmatprep.subr.bf16.mxu0 %v3891_v30  ;;  %2288 = vmatprep.subr.bf16.mxu1 %v3894_v31  ;;  %v3969_v30 = vld [vmem:[#allocation8 + $0x784] ss:$16 sps:$4 sm:$0xff]   ;;  %v3972_v31 = vld [vmem:[#allocation8 + $0x78c] ss:$16 sps:$4 sm:$0xff]  }
 0x1e4   :  { %2125 = vmatpush1.bf16.msra.mxu0 %v3889_v34  ;;  %2289 = vmatpush1.bf16.msra.mxu1 %v3892_v35  ;;  %v176_v34 = vsub.s32 6, %v4480_v37  ;;  %v3975_v35 = vld [vmem:[#allocation8 + $0x7a4] ss:$16 sps:$4 sm:$0xff]   ;;  %v4101_v37 = vld [vmem:[#allocation11 + $0x78] sm:$0xff]  }
 0x1e5   :  { %2135 = vmatprep.subr.bf16.mxu0 %v3897_v36  ;;  %2299 = vmatprep.subr.bf16.mxu1 %v3900_v41  ;;  %v3978_v36 = vld [vmem:[#allocation8 + $0x7ac] ss:$16 sps:$4 sm:$0xff]   ;;  %v3973_v41 = vld [vmem:[#allocation8 + $0x7a0] ss:$16 sps:$4 sm:$0xff]  }
 0x1e7   :  { %2127 = vmatmul.mubr.bf16.vlgmr.msra.gmra.mrb[0].mxu0 %v450_v42  ;;  %2291 = vmatmul.mubr.bf16.vlgmr.msra.gmra.mrb[16].mxu1 %v450_v42  ;;  %v177_v42 = vrot.slane %v4485_v39, %v176_v34  ;;  %v3993_v39 = vld [vmem:[#allocation10 + $0x4] ss:$8 sps:$4 sm:$0xff]  }
 0x1e8   :  { %2136 = vmatpush1.bf16.msra.mxu0 %v3895_v43  ;;  %2300 = vmatpush1.bf16.msra.mxu1 %v3898_v44  ;;  %v3981_v43 = vld [vmem:[#allocation8 + $0x7c4] ss:$16 sps:$4 sm:$0xff]   ;;  %v3984_v44 = vld [vmem:[#allocation8 + $0x7cc] ss:$16 sps:$4 sm:$0xff]  }
 0x1e9   :  { %2137 = vmatprep.subr.bf16.mxu0 %v3903_v45  ;;  %2301 = vmatprep.subr.bf16.mxu1 %v3906_v46  ;;  %v3979_v45 = vld [vmem:[#allocation8 + $0x7c0] ss:$16 sps:$4 sm:$0xff]   ;;  %v3982_v46 = vld [vmem:[#allocation8 + $0x7c8] ss:$16 sps:$4 sm:$0xff]  }
 0x1ea   :  { %2167 = vmatprep.mubr.bf16.mxu0 %v453_v4  ;;  %2331 = vmatprep.mubr.bf16.mxu1 %v453_v4  ;;  %v432_v4 = vadd.f32 %v4509_v1, %v177_v42  ;;  %v3994_v1 = vld [vmem:[#allocation10 + $0x10] ss:$8 sps:$4 sm:$0xff]   ;;  %v4096_v34 = vld [vmem:[#allocation11 + $0x20] sm:$0xff]  }
 0x1ec   :  { %2138 = vmatpush1.bf16.msra.mxu0 %v3901_v47  ;;  %2302 = vmatpush1.bf16.msra.mxu1 %v3904_v49  ;;  %v3987_v47 = vld [vmem:[#allocation8 + $0x7e4] ss:$16 sps:$4 sm:$0xff]   ;;  %v3990_v49 = vld [vmem:[#allocation8 + $0x7ec] ss:$16 sps:$4 sm:$0xff]  }
 0x1ed   :  { %2139 = vmatprep.subr.bf16.mxu0 %v3909_v50  ;;  %2303 = vmatprep.subr.bf16.mxu1 %v3912_v51  ;;  %v3985_v50 = vld [vmem:[#allocation8 + $0x7e0] ss:$16 sps:$4 sm:$0xff]   ;;  %v3988_v51 = vld [vmem:[#allocation8 + $0x7e8] ss:$16 sps:$4 sm:$0xff]  }
 0x1f0   :  { %2140 = vmatpush1.bf16.msra.mxu0 %v3907_v52  ;;  %2304 = vmatpush1.bf16.msra.mxu1 %v3910_v53  ;;  %v444_v52 = vmax.f32 %v432_v4, 0.0  ;;  %v3991_v53 = vld [vmem:[#allocation10] ss:$8 sps:$4 sm:$0xff]  }
 0x1f1   :  { %2141 = vmatprep.subr.bf16.mxu0 %v3915_v54  ;;  %2305 = vmatprep.subr.bf16.mxu1 %v3918_v56  ;;  %v3996_v56 = vld [vmem:[#allocation10 + $0x14] ss:$8 sps:$4 sm:$0xff]  }
 0x1f2   :  { %v452_v54 = vpack.c.bf16 %v444_v52, %v444_v52 }
 0x1f4   :  { %2142 = vmatpush1.bf16.msra.mxu0 %v3913_v57  ;;  %2306 = vmatpush1.bf16.msra.mxu1 %v3916_v58  ;;  %v3999_v57 = vld [vmem:[#allocation10 + $0x24] ss:$8 sps:$4 sm:$0xff]   ;;  %v3997_v58 = vld [vmem:[#allocation10 + $0x20] ss:$8 sps:$4 sm:$0xff]  }
 0x1f5   :  { %2143 = vmatprep.subr.bf16.mxu0 %v3921_v60  ;;  %2307 = vmatprep.subr.bf16.mxu1 %v3924_v61  ;;  %v4002_v60 = vld [vmem:[#allocation10 + $0x34] ss:$8 sps:$4 sm:$0xff]   ;;  %v4000_v61 = vld [vmem:[#allocation10 + $0x30] ss:$8 sps:$4 sm:$0xff]  }
 0x1f8   :  { %2144 = vmatpush1.bf16.msra.mxu0 %v3919_v62  ;;  %2308 = vmatpush1.bf16.msra.mxu1 %v3922_v63  ;;  %v4005_v62 = vld [vmem:[#allocation10 + $0x44] ss:$8 sps:$4 sm:$0xff]   ;;  %v4003_v63 = vld [vmem:[#allocation10 + $0x40] ss:$8 sps:$4 sm:$0xff]  }
 0x1f9   :  { %2145 = vmatprep.subr.bf16.mxu0 %v3927_v0  ;;  %2309 = vmatprep.subr.bf16.mxu1 %v3930_v2  ;;  %v4008_v0 = vld [vmem:[#allocation10 + $0x54] ss:$8 sps:$4 sm:$0xff]   ;;  %v4006_v2 = vld [vmem:[#allocation10 + $0x50] ss:$8 sps:$4 sm:$0xff]  }
 0x1fc   :  { %2146 = vmatpush1.bf16.msra.mxu0 %v3925_v3  ;;  %2310 = vmatpush1.bf16.msra.mxu1 %v3928_v5  ;;  %v4011_v3 = vld [vmem:[#allocation10 + $0x64] ss:$8 sps:$4 sm:$0xff]   ;;  %v4009_v5 = vld [vmem:[#allocation10 + $0x60] ss:$8 sps:$4 sm:$0xff]  }
 0x1fd   :  { %2147 = vmatprep.subr.bf16.mxu0 %v3933_v6  ;;  %2311 = vmatprep.subr.bf16.mxu1 %v3936_v7  ;;  %v4014_v6 = vld [vmem:[#allocation10 + $0x74] ss:$8 sps:$4 sm:$0xff]   ;;  %v4012_v7 = vld [vmem:[#allocation10 + $0x70] ss:$8 sps:$4 sm:$0xff]  }
 0x200   :  { %2148 = vmatpush1.bf16.msra.mxu0 %v3931_v8  ;;  %2312 = vmatpush1.bf16.msra.mxu1 %v3934_v9  ;;  %v4017_v8 = vld [vmem:[#allocation10 + $0x84] ss:$8 sps:$4 sm:$0xff]   ;;  %v4015_v9 = vld [vmem:[#allocation10 + $0x80] ss:$8 sps:$4 sm:$0xff]  }
 0x201   :  { %2149 = vmatprep.subr.bf16.mxu0 %v3939_v12  ;;  %2313 = vmatprep.subr.bf16.mxu1 %v3942_v13  ;;  %v4020_v12 = vld [vmem:[#allocation10 + $0x94] ss:$8 sps:$4 sm:$0xff]   ;;  %v4018_v13 = vld [vmem:[#allocation10 + $0x90] ss:$8 sps:$4 sm:$0xff]  }
 0x204   :  { %2150 = vmatpush1.bf16.msra.mxu0 %v3937_v14  ;;  %2314 = vmatpush1.bf16.msra.mxu1 %v3940_v15  ;;  %v4023_v14 = vld [vmem:[#allocation10 + $0xa4] ss:$8 sps:$4 sm:$0xff]   ;;  %v4021_v15 = vld [vmem:[#allocation10 + $0xa0] ss:$8 sps:$4 sm:$0xff]  }
 0x205   :  { %2151 = vmatprep.subr.bf16.mxu0 %v3945_v16  ;;  %2315 = vmatprep.subr.bf16.mxu1 %v3948_v17  ;;  %v4026_v16 = vld [vmem:[#allocation10 + $0xb4] ss:$8 sps:$4 sm:$0xff]   ;;  %v4024_v17 = vld [vmem:[#allocation10 + $0xb0] ss:$8 sps:$4 sm:$0xff]  }
 0x208   :  { %2152 = vmatpush1.bf16.msra.mxu0 %v3943_v18  ;;  %2316 = vmatpush1.bf16.msra.mxu1 %v3946_v19  ;;  %v4029_v18 = vld [vmem:[#allocation10 + $0xc4] ss:$8 sps:$4 sm:$0xff]   ;;  %v4027_v19 = vld [vmem:[#allocation10 + $0xc0] ss:$8 sps:$4 sm:$0xff]  }
 0x209   :  { %2153 = vmatprep.subr.bf16.mxu0 %v3951_v59  ;;  %2317 = vmatprep.subr.bf16.mxu1 %v3954_v20  ;;  %v4032_v59 = vld [vmem:[#allocation10 + $0xd4] ss:$8 sps:$4 sm:$0xff]   ;;  %v4030_v20 = vld [vmem:[#allocation10 + $0xd0] ss:$8 sps:$4 sm:$0xff]  }
 0x20c   :  { %2154 = vmatpush1.bf16.msra.mxu0 %v3949_v21  ;;  %2318 = vmatpush1.bf16.msra.mxu1 %v3952_v22  ;;  %v4035_v21 = vld [vmem:[#allocation10 + $0xe4] ss:$8 sps:$4 sm:$0xff]   ;;  %v4033_v22 = vld [vmem:[#allocation10 + $0xe0] ss:$8 sps:$4 sm:$0xff]  }
 0x20d   :  { %2155 = vmatprep.subr.bf16.mxu0 %v3957_v23  ;;  %2319 = vmatprep.subr.bf16.mxu1 %v3960_v24  ;;  %v4038_v23 = vld [vmem:[#allocation10 + $0xf4] ss:$8 sps:$4 sm:$0xff]   ;;  %v4036_v24 = vld [vmem:[#allocation10 + $0xf0] ss:$8 sps:$4 sm:$0xff]  }
 0x210   :  { %2156 = vmatpush1.bf16.msra.mxu0 %v3955_v25  ;;  %2320 = vmatpush1.bf16.msra.mxu1 %v3958_v11  ;;  %v4041_v25 = vld [vmem:[#allocation10 + $0x104] ss:$8 sps:$4 sm:$0xff]  }
 0x211   :  { %2157 = vmatprep.subr.bf16.mxu0 %v3963_v26  ;;  %2321 = vmatprep.subr.bf16.mxu1 %v3966_v27  ;;  %v4087_v11 = vld [vmem:[#allocation11 + $0x40] sm:$0xff]   ;;  %v4089_v27 = vld [vmem:[#allocation11 + $0x48] sm:$0xff]  }
 0x212   :  { %v4088_v26 = vld [vmem:[#allocation11] sm:$0xff]  }
 0x214   :  { %2158 = vmatpush1.bf16.msra.mxu0 %v3961_v28  ;;  %2322 = vmatpush1.bf16.msra.mxu1 %v3964_v29  ;;  %v4090_v28 = vld [vmem:[#allocation11 + $0x8] sm:$0xff]   ;;  %v4091_v29 = vld [vmem:[#allocation11 + $0x50] sm:$0xff]  }
 0x215   :  { %2159 = vmatprep.subr.bf16.mxu0 %v3969_v30  ;;  %2323 = vmatprep.subr.bf16.mxu1 %v3972_v31  ;;  %v4092_v30 = vld [vmem:[#allocation11 + $0x10] sm:$0xff]   ;;  %v4093_v31 = vld [vmem:[#allocation11 + $0x58] sm:$0xff]  }
 0x218   :  { %2160 = vmatpush1.bf16.msra.mxu0 %v3967_v32  ;;  %2324 = vmatpush1.bf16.msra.mxu1 %v3970_v33  ;;  %v4094_v32 = vld [vmem:[#allocation11 + $0x18] sm:$0xff]   ;;  %v4095_v33 = vld [vmem:[#allocation11 + $0x60] sm:$0xff]  }
 0x219   :  { %2161 = vmatprep.subr.bf16.mxu0 %v3975_v35  ;;  %2325 = vmatprep.subr.bf16.mxu1 %v3978_v36  ;;  %v4097_v35 = vld [vmem:[#allocation11 + $0x68] sm:$0xff]  }
 0x21a   :  { %v4098_v36 = vld [vmem:[#allocation11 + $0x28] sm:$0xff]  }
 0x21c   :  { %2162 = vmatpush1.bf16.msra.mxu0 %v3973_v41  ;;  %2326 = vmatpush1.bf16.msra.mxu1 %v3976_v10  ;;  %v4528_v41 = vld [vmem:[%s4570_s4] sm:$0xf] }
 0x21d   :  { %2163 = vmatprep.subr.bf16.mxu0 %v3981_v43  ;;  %2327 = vmatprep.subr.bf16.mxu1 %v3984_v44  ;;  %v715_v10 = vrot.slane %v4528_v41, %v4483_v38  ;;  %v719_v42 = vrot.slane %v4528_v41, %v4488_v40  ;;  %v727_v43 = vrot.slane %v4528_v41, %v164_v48 }
 0x220   :  { %2164 = vmatpush1.bf16.msra.mxu0 %v3979_v45  ;;  %2328 = vmatpush1.bf16.msra.mxu1 %v3982_v46 }
 0x221   :  { %2165 = vmatprep.subr.bf16.mxu0 %v3987_v47  ;;  %2329 = vmatprep.subr.bf16.mxu1 %v3990_v49 }
 0x224   :  { %2166 = vmatpush1.bf16.msra.mxu0 %v3985_v50  ;;  %2330 = vmatpush1.bf16.msra.mxu1 %v3988_v51 }
 0x225   :  { %2744 = vmatprep.subr.bf16.mxu0 %v3993_v39  ;;  %3503 = vmatprep.subr.bf16.mxu1 %v4087_v11  ;;  %v723_v11 = vrot.slane %v4528_v41, %v160_v55  ;;  %v4102_v55 = vld [vmem:[#allocation11 + $0x38] sm:$0xff]  }
 0x227   :  { %2168 = vmatmul.mubr.bf16.vlgmr.msra.gmra.mrb[0].mxu0 %v452_v54  ;;  %2332 = vmatmul.mubr.bf16.vlgmr.msra.gmra.mrb[16].mxu1 %v452_v54 }
 0x228   :  { %2745 = vmatpush1.bf16.msra.mxu0 %v3991_v53  ;;  %3504 = vmatpush3.bf16.msra.mxu1 %v4088_v26  ;;  %v4083_v26 = vld [vmem:[#allocation10 + $0x1e4] ss:$8 sps:$4 sm:$0xff]  }
 0x229   :  { %2746 = vmatprep.subr.bf16.mxu0 %v3996_v56  ;;  %3505 = vmatprep.subr.bf16.mxu1 %v4089_v27  ;;  %v4081_v27 = vld [vmem:[#allocation10 + $0x1e0] ss:$8 sps:$4 sm:$0xff]  }
 0x22c   :  { %2747 = vmatpush1.bf16.msra.mxu0 %v3994_v1  ;;  %3506 = vmatpush3.bf16.msra.mxu1 %v4090_v28 }
 0x22d   :  { %2748 = vmatprep.subr.bf16.mxu0 %v3999_v57  ;;  %3507 = vmatprep.subr.bf16.mxu1 %v4091_v29  ;;  %v4086_v29 = vld [vmem:[#allocation10 + $0x1f4] ss:$8 sps:$4 sm:$0xff]  }
 0x230   :  { %2749 = vmatpush1.bf16.msra.mxu0 %v3997_v58  ;;  %3508 = vmatpush3.bf16.msra.mxu1 %v4092_v30  ;;  %v4039_v58 = vld [vmem:[#allocation10 + $0x100] ss:$8 sps:$4 sm:$0xff]   ;;  %v4084_v30 = vld [vmem:[#allocation10 + $0x1f0] ss:$8 sps:$4 sm:$0xff]  }
 0x231   :  { %2750 = vmatprep.subr.bf16.mxu0 %v4002_v60  ;;  %3509 = vmatprep.subr.bf16.mxu1 %v4093_v31 }
 0x234   :  { %2751 = vmatpush1.bf16.msra.mxu0 %v4000_v61  ;;  %3510 = vmatpush3.bf16.msra.mxu1 %v4094_v32  ;;  %v4044_v61 = vld [vmem:[#allocation10 + $0x114] ss:$8 sps:$4 sm:$0xff]  }
 0x235   :  { %2752 = vmatprep.subr.bf16.mxu0 %v4005_v62  ;;  %3511 = vmatprep.subr.bf16.mxu1 %v4095_v33  ;;  %v4042_v62 = vld [vmem:[#allocation10 + $0x110] ss:$8 sps:$4 sm:$0xff]  }
 0x236   :  { %v4099_v33 = vld [vmem:[#allocation11 + $0x70] sm:$0xff]  }
 0x238   :  { %2753 = vmatpush1.bf16.msra.mxu0 %v4003_v63  ;;  %3512 = vmatpush3.bf16.msra.mxu1 %v4096_v34  ;;  %v4047_v63 = vld [vmem:[#allocation10 + $0x124] ss:$8 sps:$4 sm:$0xff]   ;;  %v4100_v34 = vld [vmem:[#allocation11 + $0x30] sm:$0xff]  }
 0x239   :  { %2754 = vmatprep.subr.bf16.mxu0 %v4008_v0  ;;  %3513 = vmatprep.subr.bf16.mxu1 %v4097_v35  ;;  %v4045_v0 = vld [vmem:[#allocation10 + $0x120] ss:$8 sps:$4 sm:$0xff]   ;;  %v4313_v35 = vmov 0.0  }
 0x23c   :  { %2755 = vmatpush1.bf16.msra.mxu0 %v4006_v2  ;;  %3514 = vmatpush3.bf16.msra.mxu1 %v4098_v36  ;;  %v4050_v2 = vld [vmem:[#allocation10 + $0x134] ss:$8 sps:$4 sm:$0xff]  }
 0x23d   :  { %2756 = vmatprep.subr.bf16.mxu0 %v4011_v3  ;;  %v4048_v3 = vld [vmem:[#allocation10 + $0x130] ss:$8 sps:$4 sm:$0xff]   ;;  %3515 = vmatprep.subr.bf16.mxu1 %v4099_v33  ;;  %v2412_v36 = vld [vmem:[%s4572_s6] sm:$0x3] }
 0x23e   :  { %v2417_v41 = vrot.slane %v2412_v36, %v4483_v38  ;;  %v4105_v38 = vld [vmem:[#allocation13 + $0x10] sm:$0xff]  }
 0x240   :  { %2757 = vmatpush1.bf16.msra.mxu0 %v4009_v5  ;;  %v4053_v5 = vld [vmem:[#allocation10 + $0x144] ss:$8 sps:$4 sm:$0xff]   ;;  %3516 = vmatpush3.bf16.msra.mxu1 %v4100_v34 }
 0x241   :  { %2758 = vmatprep.subr.bf16.mxu0 %v4014_v6  ;;  %v4051_v6 = vld [vmem:[#allocation10 + $0x140] ss:$8 sps:$4 sm:$0xff]   ;;  %3517 = vmatprep.subr.bf16.mxu1 %v4101_v37 }
 0x244   :  { %2759 = vmatpush1.bf16.msra.mxu0 %v4012_v7  ;;  %v4056_v7 = vld [vmem:[#allocation10 + $0x154] ss:$8 sps:$4 sm:$0xff]   ;;  %3518 = vmatpush3.bf16.msra.mxu1 %v4102_v55 }
 0x245   :  { %2760 = vmatprep.subr.bf16.mxu0 %v4017_v8  ;;  %v4054_v8 = vld [vmem:[#allocation10 + $0x150] ss:$8 sps:$4 sm:$0xff]   ;;  %3534 = vmatprep.subr.bf16.mxu1 %v4313_v35 }
 0x248   :  { %2761 = vmatpush1.bf16.msra.mxu0 %v4015_v9  ;;  %v4059_v9 = vld [vmem:[#allocation10 + $0x164] ss:$8 sps:$4 sm:$0xff]  }
 0x249   :  { %2762 = vmatprep.subr.bf16.mxu0 %v4020_v12  ;;  %v4057_v12 = vld [vmem:[#allocation10 + $0x160] ss:$8 sps:$4 sm:$0xff]  }
 0x24c   :  { %2763 = vmatpush1.bf16.msra.mxu0 %v4018_v13  ;;  %v4062_v13 = vld [vmem:[#allocation10 + $0x174] ss:$8 sps:$4 sm:$0xff]  }
 0x24d   :  { %2764 = vmatprep.subr.bf16.mxu0 %v4023_v14  ;;  %v4060_v14 = vld [vmem:[#allocation10 + $0x170] ss:$8 sps:$4 sm:$0xff]  }
 0x250   :  { %2765 = vmatpush1.bf16.msra.mxu0 %v4021_v15  ;;  %v4065_v15 = vld [vmem:[#allocation10 + $0x184] ss:$8 sps:$4 sm:$0xff]  }
 0x251   :  { %2766 = vmatprep.subr.bf16.mxu0 %v4026_v16  ;;  %v4063_v16 = vld [vmem:[#allocation10 + $0x180] ss:$8 sps:$4 sm:$0xff]  }
 0x254   :  { %2767 = vmatpush1.bf16.msra.mxu0 %v4024_v17  ;;  %v4068_v17 = vld [vmem:[#allocation10 + $0x194] ss:$8 sps:$4 sm:$0xff]  }
 0x255   :  { %2768 = vmatprep.subr.bf16.mxu0 %v4029_v18  ;;  %v4066_v18 = vld [vmem:[#allocation10 + $0x190] ss:$8 sps:$4 sm:$0xff]  }
 0x258   :  { %2769 = vmatpush1.bf16.msra.mxu0 %v4027_v19  ;;  %v4071_v19 = vld [vmem:[#allocation10 + $0x1a4] ss:$8 sps:$4 sm:$0xff]  }
 0x259   :  { %2770 = vmatprep.subr.bf16.mxu0 %v4032_v59  ;;  %v4069_v59 = vld [vmem:[#allocation10 + $0x1a0] ss:$8 sps:$4 sm:$0xff]  }
 0x25c   :  { %2771 = vmatpush1.bf16.msra.mxu0 %v4030_v20  ;;  %v4074_v20 = vld [vmem:[#allocation10 + $0x1b4] ss:$8 sps:$4 sm:$0xff]  }
 0x25d   :  { %2772 = vmatprep.subr.bf16.mxu0 %v4035_v21  ;;  %v4072_v21 = vld [vmem:[#allocation10 + $0x1b0] ss:$8 sps:$4 sm:$0xff]  }
 0x260   :  { %2773 = vmatpush1.bf16.msra.mxu0 %v4033_v22  ;;  %v4077_v22 = vld [vmem:[#allocation10 + $0x1c4] ss:$8 sps:$4 sm:$0xff]  }
 0x261   :  { %2774 = vmatprep.subr.bf16.mxu0 %v4038_v23  ;;  %v4075_v23 = vld [vmem:[#allocation10 + $0x1c0] ss:$8 sps:$4 sm:$0xff]  }
 0x264   :  { %2775 = vmatpush1.bf16.msra.mxu0 %v4036_v24  ;;  %v4080_v24 = vld [vmem:[#allocation10 + $0x1d4] ss:$8 sps:$4 sm:$0xff]  }
 0x265   :  { %2785 = vmatprep.subr.bf16.mxu0 %v4041_v25  ;;  %v4078_v25 = vld [vmem:[#allocation10 + $0x1d0] ss:$8 sps:$4 sm:$0xff]  }
 0x2fa   :  { %v2169_v44 = vpop.f32.mrb[0].mxu0  ;;  %v4537_v45 = vpop.f32.mrb[16].mxu1 }
 0x2fb   :  { %v3554_v46 = vadd.f32 %v2169_v44, %v715_v10  ;;  %v2171_v4 = vpop.f32.mrb[1].mxu0  ;;  %v2335_v47 = vpop.f32.mrb[17].mxu1  ;;  %v3556_v28 = vadd.f32 %v4537_v45, %v723_v11  ;;  %v2421_v10 = vrot.slane %v2412_v36, %v4488_v40  ;;  %v4106_v40 = vld [vmem:[#allocation13 + $0x18] sm:$0xff]  }
 0x2fc   :  { %v3555_v49 = vadd.f32 %v2171_v4, %v719_v42  ;;  %v3557_v50 = vadd.f32 %v2335_v47, %v727_v43  ;;  %v2173_v51 = vpop.f32.mrb[2].mxu0  ;;  %v2337_v52 = vpop.f32.mrb[18].mxu1 }
 0x2fd   :  { %v2340_v39 = vmax.f32 %v3554_v46, 0.0  ;;  %v2174_v53 = vpop.f32.mrb[3].mxu0  ;;  %v2338_v54 = vpop.f32.mrb[19].mxu1  ;;  %v2342_v31 = vmax.f32 %v3556_v28, 0.0  ;;  %v4103_v51 = vld [vmem:[#allocation13] sm:$0xff]  }
 0x2fe   :  { %v2341_v56 = vmax.f32 %v3555_v49, 0.0  ;;  %v2343_v1 = vmax.f32 %v3557_v50, 0.0  ;;  %v4107_v53 = vld [vmem:[#allocation13 + $0x20] sm:$0xff]   ;;  %v4108_v54 = vld [vmem:[#allocation13 + $0x28] sm:$0xff]  }
 0x2ff   :  { %v2344_v60 = vpack.c.bf16 %v2340_v39, %v2340_v39  ;;  %v2346_v32 = vpack.c.bf16 %v2342_v31, %v2342_v31  ;;  %v4104_v39 = vld [vmem:[#allocation13 + $0x8] sm:$0xff]  }
 0x300   :  { %v2345_v57 = vpack.c.bf16 %v2341_v56, %v2341_v56  ;;  %v2347_v48 = vpack.c.bf16 %v2343_v1, %v2343_v1  ;;  %v4109_v56 = vld [vmem:[#allocation13 + $0x30] sm:$0xff]   ;;  %v4110_v1 = vld [vmem:[#allocation13 + $0x38] sm:$0xff]  }
 0x302   :  { %2776 = vmatprep.mubr.bf16.mxu0 %v2345_v57 }
 0x303   :  { %2777 = vmatmul.mubr.bf16.vlgmr.msra.gmra.mrb[4].mxu0 %v2344_v60 }
 0x304   :  { %2786 = vmatpush1.bf16.msra.mxu0 %v4039_v58  ;;  %2817 = vmatprep.mubr.bf16.mxu0 %v2347_v48  ;;  %v3477_v58 = vld [vmem:[%s4574_s8] ss:$0 sm:$0xff]  ;;  %s4265_s8 = scalar_lea.vmem %s3126_s7, 128 }
 0x305   :  { %2787 = vmatprep.subr.bf16.mxu0 %v4044_v61  ;;  %p4266_p0 = scmp.ne.s32.totalorder %s3126_s7, %s4265_s8  ;;  %p4271_p2 = scmp.lt.s32.totalorder %s4265_s8, %s4265_s8 }
 0x307   :  { %p4272_p3 = por %p4271_p2, %p4270_p1 }
 0x308   :  { %2788 = vmatpush1.bf16.msra.mxu0 %v4042_v62 }
 0x309   :  { %2789 = vmatprep.subr.bf16.mxu0 %v4047_v63  ;;  %p4273_p4 = pnand %p4272_p3, %p4266_p0 }
 0x30c   :  { %2790 = vmatpush1.bf16.msra.mxu0 %v4045_v0 }
 0x30d   :  { %2791 = vmatprep.subr.bf16.mxu0 %v4050_v2 }
 0x310   :  { %2792 = vmatpush1.bf16.msra.mxu0 %v4048_v3  ;;  %v3494_v3 = vld [vmem:[%s4576_s10] ss:$0 sm:$0xff] }
 0x311   :  { %2793 = vmatprep.subr.bf16.mxu0 %v4053_v5 }
 0x314   :  { %2794 = vmatpush1.bf16.msra.mxu0 %v4051_v6 }
 0x315   :  { %2795 = vmatprep.subr.bf16.mxu0 %v4056_v7 }
 0x318   :  { %2796 = vmatpush1.bf16.msra.mxu0 %v4054_v8 }
 0x319   :  { %2797 = vmatprep.subr.bf16.mxu0 %v4059_v9 }
 0x31c   :  { %2798 = vmatpush1.bf16.msra.mxu0 %v4057_v12 }
 0x31d   :  { %2799 = vmatprep.subr.bf16.mxu0 %v4062_v13 }
 0x320   :  { %2800 = vmatpush1.bf16.msra.mxu0 %v4060_v14 }
 0x321   :  { %2801 = vmatprep.subr.bf16.mxu0 %v4065_v15 }
 0x324   :  { %2802 = vmatpush1.bf16.msra.mxu0 %v4063_v16 }
 0x325   :  { %2803 = vmatprep.subr.bf16.mxu0 %v4068_v17 }
 0x328   :  { %2804 = vmatpush1.bf16.msra.mxu0 %v4066_v18 }
 0x329   :  { %2805 = vmatprep.subr.bf16.mxu0 %v4071_v19 }
 0x32c   :  { %2806 = vmatpush1.bf16.msra.mxu0 %v4069_v59 }
 0x32d   :  { %2807 = vmatprep.subr.bf16.mxu0 %v4074_v20 }
 0x330   :  { %2808 = vmatpush1.bf16.msra.mxu0 %v4072_v21 }
 0x331   :  { %2809 = vmatprep.subr.bf16.mxu0 %v4077_v22 }
 0x334   :  { %2810 = vmatpush1.bf16.msra.mxu0 %v4075_v23 }
 0x335   :  { %2811 = vmatprep.subr.bf16.mxu0 %v4080_v24 }
 0x338   :  { %2812 = vmatpush1.bf16.msra.mxu0 %v4078_v25 }
 0x339   :  { %2813 = vmatprep.subr.bf16.mxu0 %v4083_v26 }
 0x33c   :  { %2814 = vmatpush1.bf16.msra.mxu0 %v4081_v27 }
 0x33d   :  { %2815 = vmatprep.subr.bf16.mxu0 %v4086_v29 }
 0x340   :  { %2816 = vmatpush1.bf16.msra.mxu0 %v4084_v30 }
 0x343   :  { %2818 = vmatmul.mubr.bf16.vlgmr.msra.gmra.mrb[4].mxu0 %v2346_v32 }
 0x416   :  { %v2819_v42 = vpop.f32.mrb[4].mxu0 }
 0x417   :  { %v3558_v43 = vadd.f32 %v2819_v42, %v2417_v41  ;;  %v2821_v44 = vpop.f32.mrb[5].mxu0 }
 0x418   :  { %v3559_v45 = vadd.f32 %v2821_v44, %v2421_v10  ;;  %v2823_v46 = vpop.f32.mrb[6].mxu0 }
 0x419   :  { %v2826_v4 = vmax.f32 %v3558_v43, 0.0  ;;  %v2824_v47 = vpop.f32.mrb[7].mxu0 }
 0x41a   :  { %v2827_v49 = vmax.f32 %v3559_v45, 0.0 }
 0x41b   :  { %v2828_v52 = vpack.c.bf16 %v2826_v4, %v2826_v4 }
 0x41c   :  { %v2829_v50 = vpack.c.bf16 %v2827_v49, %v2827_v49 }
 0x41e   :  { %2997 = vmatprep.mubr.bf16.mxu1 %v2829_v50 }
 0x41f   :  { %2998 = vmatmul.mubr.bf16.vlgmr.msra.gmra.mrb[20].mxu1 %v2828_v52 }
 0x420   :  { %3535 = vmatpush3.bf16.msra.mxu1 %v4103_v51  ;;  %3550 = vmatprep.mubr.msk.bf16.mxu1 %vm4314_vm1, %v4313_v35 }
 0x421   :  { %3536 = vmatprep.subr.bf16.mxu1 %v4313_v35 }
 0x424   :  { %3537 = vmatpush3.bf16.msra.mxu1 %v4104_v39 }
 0x425   :  { %3538 = vmatprep.subr.bf16.mxu1 %v4313_v35 }
 0x428   :  { %3539 = vmatpush3.bf16.msra.mxu1 %v4105_v38 }
 0x429   :  { %3540 = vmatprep.subr.bf16.mxu1 %v4313_v35 }
 0x42c   :  { %3541 = vmatpush3.bf16.msra.mxu1 %v4106_v40 }
 0x42d   :  { %3542 = vmatprep.subr.bf16.mxu1 %v4313_v35 }
 0x430   :  { %3543 = vmatpush3.bf16.msra.mxu1 %v4107_v53 }
 0x431   :  { %3544 = vmatprep.subr.bf16.mxu1 %v4313_v35 }
 0x434   :  { %3545 = vmatpush3.bf16.msra.mxu1 %v4108_v54 }
 0x435   :  { %3546 = vmatprep.subr.bf16.mxu1 %v4313_v35 }
 0x438   :  { %3547 = vmatpush3.bf16.msra.mxu1 %v4109_v56 }
 0x439   :  { %3548 = vmatprep.subr.bf16.mxu1 %v4313_v35 }
 0x43c   :  { %3549 = vmatpush3.bf16.msra.mxu1 %v4110_v1 }
 0x4f2   :  { %v3519_v57 = vpop.f32.mrb[20].mxu1 }
 0x4f3   :  { %v3520_v60 = vpop.f32.mrb[21].mxu1 }
 0x4f4   :  { %v3521_v61 = vadd.f32 %v3520_v60, %v3519_v57  ;;  %v3522_v48 = vpop.f32.mrb[22].mxu1 }
 0x4f5   :  { %v3523_v62 = vpop.f32.mrb[23].mxu1 }
 0x4f6   :  { %v3000_v63 = vadd.f32 %v3521_v61, %v3477_v58 }
 0x4f8   :  { %v3005_v0 = vmax.f32 %v3000_v63, 0.0 }
 0x4fa   :  { %v3006_v2 = vpack.c.bf16 %v3005_v0, %v3005_v0 }
 0x4fc   :  { %3551 = vmatmul.mubr.bf16.vlgmr.msra.gmra.mrb[24].mxu1 %v3006_v2 }
 0x5cf   :  { %v3112_v5 = vpop.f32.mrb[24].mxu1 }
 0x5d0   :  { %v3113_v6 = vadd.f32 %v3494_v3, %v3112_v5  ;;  %v3552_v7 = vpop.f32.mrb[25].mxu1 }
 0x5d1   :  { %v3115_v8 = vpop.f32.mrb[26].mxu1 }
 0x5d2   :  { %3118 = vst [vmem:[#allocation14] sm:$0xff] %v3113_v6  ;;  %v3553_v9 = vpop.f32.mrb[27].mxu1 }
 0x5d3   :  { %4276 = shalt.err (!%p4273_p4)
}
 0x5d4   :  { %s4277_s10 = scalar_lea.hbm %s4577_s11, 128 }
 0x5d5   :  { %p4278_p5 = scmp.ne.s32.totalorder %s4577_s11, %s4277_s10  ;;  %p4281_p6 = scmp.lt.u32.totalorder %s4277_s10, %s4577_s11 }
 0x5d7   :  { %p4283_p7 = pnand %p4281_p6, %p4278_p5 }
 0x5d9   :  { %4286 = shalt.err (!%p4283_p7)
}
 0x5da   :  { %3128 = dma.vmem_to_hbm [thread:$0]  %s3126_s7, 128, %s4577_s11, [#allocation4]  }
 0x5db   :  { %4295 = dma.done.wait [#allocation4], 128  }
 0x5dc   :  { %4296 = vsyncadd [#allocation4], 4294967168 }
 0x5dd   :  { %3132 = vsyncpa [#allocation3], 1 }
 0x5de   :  { %3133 = vsyncpa [#allocation6], 1 }
 0x5df   :  { %3134 = vsyncpa [#allocation9], 1 }
 0x5e0   :  { %3135 = vsyncpa [#allocation12], 1 }
 0x5e1   :  { %3136 = vsyncpa [#allocation4], 1 }

</bundles_post_ra>
